<compile_context>
chip_gen: v6e
topology: v6e:2x2x1
jax: 0.10.0
libtpu: 0.0.40
codegen_flags: <defaults>
</compile_context>

<pallas_src>
import numpy as np
import jax
import jax.numpy as jnp
from jax.experimental import pallas as pl
from jax.experimental.pallas import tpu as pltpu


# ---------------------------------------------------------------------------
# Deterministic "parameter" setup (mirrors _fspecial_gauss_1d in __init__)
# ---------------------------------------------------------------------------
def _gauss_1d(size, sigma):
    coords = np.arange(size, dtype=np.float32) - (size // 2)
    g = np.exp(-(coords ** 2) / (2.0 * sigma ** 2))
    return (g / g.sum()).astype(np.float32)


_VMEM_LIMIT_BYTES = 32 * 1024 * 1024   # <= physical / default on all of v5e/v6e/v7x
_VMEM_BUDGET_BYTES = 20 * 1024 * 1024  # headroom below the limit


def _pick_planes_per_step(n_planes, H, W):
    """How many (H, W) planes each grid step processes.

    Per-plane f32 footprint model for one grid step:
      * x/y input blocks, double-buffered by the BlockSpec pipeline:
        2 arrays * 2 buffers * H*W*4            = 16 * H*W bytes
      * compiler-managed intermediates (x*x/y*y/x*y products, row-conv temps,
        5 filtered maps, SSIM-map temporaries), conservatively ~16 full-size
        f32 planes                              = 64 * H*W bytes
    Kept under _VMEM_BUDGET_BYTES (scoped limit raised to 32 MiB below).
    """
    per_plane_bytes = 80 * H * W * 4
    b = max(1, min(n_planes, _VMEM_BUDGET_BYTES // max(per_plane_bytes, 1)))
    if n_planes >= 2:
        # keep at least two grid steps so v7x's two TensorCores both get work
        b = min(b, max(1, n_planes // 2))
    while n_planes % b:
        b -= 1
    return b


# ---------------------------------------------------------------------------
# Pallas kernel
# ---------------------------------------------------------------------------
def _make_ssim_kernel(C1, C2, taps):
    ws = len(taps)

    def kernel(x_ref, y_ref, out_ref):
        x = x_ref[...]                      # (B, H, W) f32
        y = y_ref[...]
        B, H, W = x.shape
        Ho, Wo = H - ws + 1, W - ws + 1

        def gfilt(a):
            # Separable "valid" Gaussian conv as an unrolled shift-FMA:
            # H pass first (sublane-offset slices, larger extent), then the
            # lane-shift W pass on the already-shrunk (B, Ho, W) temp.
            # No MXU work, no banded Gh/Gw buffers.
            t = taps[0] * a[:, 0:Ho, :]
            for k in range(1, ws):
                t = t + taps[k] * a[:, k:k + Ho, :]
            o = taps[0] * t[:, :, 0:Wo]
            for k in range(1, ws):
                o = o + taps[k] * t[:, :, k:k + Wo]
            return o                        # (B, Ho, Wo)

        mu1 = gfilt(x)
        mu2 = gfilt(y)
        exx = gfilt(x * x)
        eyy = gfilt(y * y)
        exy = gfilt(x * y)

        mu1_sq = mu1 * mu1
        mu2_sq = mu2 * mu2
        mu1_mu2 = mu1 * mu2
        sigma1_sq = exx - mu1_sq
        sigma2_sq = eyy - mu2_sq
        sigma12 = exy - mu1_mu2

        # Fused single divide:
        #   ssim = ((2*mu1mu2+C1)*(2*s12+C2)) / ((mu1^2+mu2^2+C1)*(s1+s2+C2))
        num = (2.0 * mu1_mu2 + C1) * (2.0 * sigma12 + C2)
        den = (mu1_sq + mu2_sq + C1) * (sigma1_sq + sigma2_sq + C2)
        ssim_map = num / den

        # Partial sum for this plane-batch; global mean finished in wrapper.
        out_ref[...] = jnp.sum(ssim_map, keepdims=True)

    return kernel


# ---------------------------------------------------------------------------
# Wrapper (== SSIMLoss(...).forward(X, Y) with default args)
# ---------------------------------------------------------------------------
def ssim_loss_forward(X, Y, data_range=255, win_size=11, win_sigma=1.5,
                      K=(0.01, 0.03)):
    assert X.shape == Y.shape
    N, C, H, W = X.shape
    # TODO(synk): the "skip Gaussian smoothing when spatial dim < win_size"
    # warning-branch of gaussian_filter is not implemented.
    assert H >= win_size and W >= win_size
    # TODO(synk): only size_average=True and nonnegative_ssim=False (the
    # module defaults) are implemented.
    # TODO(synk): very large planes (per-plane f32 footprint beyond the VMEM
    # budget) would need spatial halo tiling (ws-1 overlap); not implemented.

    C1 = float((K[0] * data_range) ** 2)
    C2 = float((K[1] * data_range) ** 2)
    taps = tuple(float(v) for v in _gauss_1d(win_size, win_sigma))

    n_planes = N * C
    Ho, Wo = H - win_size + 1, W - win_size + 1
    B = _pick_planes_per_step(n_planes, H, W)
    G = n_planes // B

    xf = X.reshape(n_planes, H, W).astype(jnp.float32)
    yf = Y.reshape(n_planes, H, W).astype(jnp.float32)

    kernel = _make_ssim_kernel(C1, C2, taps)

    partials = pl.pallas_call(
        kernel,
        out_shape=jax.ShapeDtypeStruct((G, 1, 1), jnp.float32),
        grid=(G,),
        in_specs=[
            pl.BlockSpec((B, H, W), lambda i: (i, 0, 0)),
            pl.BlockSpec((B, H, W), lambda i: (i, 0, 0)),
        ],
        out_specs=pl.BlockSpec((1, 1, 1), lambda i: (i, 0, 0)),
        compiler_params=pltpu.CompilerParams(
            dimension_semantics=("parallel",),
            vmem_limit_bytes=_VMEM_LIMIT_BYTES),
    )(xf, yf)

    # Global mean over all valid pixels of all N*C planes (== mean of the
    # per-channel means, since every plane has the same valid-window size).
    return jnp.sum(partials) / float(n_planes * Ho * Wo)


# ---------------------------------------------------------------------------
# Pure-numpy reference (mirrors _ssim / ssim with defaults) for sanity check
# ---------------------------------------------------------------------------
def _ref_ssim(X, Y, data_range=255, win_size=11, win_sigma=1.5, K=(0.01, 0.03)):
    X = np.asarray(X, np.float32)
    Y = np.asarray(Y, np.float32)
    g = _gauss_1d(win_size, win_sigma)
    ws = win_size

    def gfilt(a):
        N, C, H, W = a.shape
        t = np.zeros((N, C, H - ws + 1, W), np.float32)
        for k in range(ws):
            t += g[k] * a[:, :, k:k + H - ws + 1, :]
        o = np.zeros((N, C, H - ws + 1, W - ws + 1), np.float32)
        for k in range(ws):
            o += g[k] * t[:, :, :, k:k + W - ws + 1]
        return o

    C1 = (K[0] * data_range) ** 2
    C2 = (K[1] * data_range) ** 2
    mu1, mu2 = gfilt(X), gfilt(Y)
    s11 = gfilt(X * X) - mu1 * mu1
    s22 = gfilt(Y * Y) - mu2 * mu2
    s12 = gfilt(X * Y) - mu1 * mu2
    cs = (2 * s12 + C2) / (s11 + s22 + C2)
    sm = (2 * mu1 * mu2 + C1) / (mu1 * mu1 + mu2 * mu2 + C1) * cs
    return sm.reshape(sm.shape[0], sm.shape[1], -1).mean(-1).mean()


if __name__ == "__main__":
    key = jax.random.PRNGKey(0)
    kx, ky = jax.random.split(key)
    N, C, H, W = 2, 3, 16, 16  # channel=3 matches SSIMLoss default
    X = jax.random.uniform(kx, (N, C, H, W), jnp.float32) * 255.0
    Y = jax.random.uniform(ky, (N, C, H, W), jnp.float32) * 255.0

    out = ssim_loss_forward(X, Y)
    out = jax.block_until_ready(out)

    ref = _ref_ssim(np.asarray(X), np.asarray(Y))
    np.testing.assert_allclose(np.asarray(out), ref, rtol=1e-4, atol=1e-5)

    print("KERNEL_OK")
</pallas_src>

<mosaic_0001>
module attributes {stable_mosaic.version = 11 : i64} {
  func.func @kernel(%arg0: i32, %arg1: memref<3x16x16xf32, #tpu.memory_space<vmem>>, %arg2: memref<3x16x16xf32, #tpu.memory_space<vmem>>, %arg3: memref<1x1x1xf32, #tpu.memory_space<vmem>>) attributes {dimension_semantics = [#tpu.dimension_semantics<parallel>], iteration_bounds = array<i64: 2>, scalar_prefetch = 0 : i64, scratch_operands = 0 : i64, tpu.core_type = #tpu.core_type<tc>, window_params = [{transform_indices = @transform_0, window_bounds = array<i64: 3, 16, 16>}, {transform_indices = @transform_1, window_bounds = array<i64: 3, 16, 16>}, {transform_indices = @transform_2, window_bounds = array<i64: 1, 1, 1>}]} {
    %c0 = arith.constant 0 : index
    %c0_0 = arith.constant 0 : index
    %c0_1 = arith.constant 0 : index
    %0 = vector.load %arg1[%c0, %c0_0, %c0_1] : memref<3x16x16xf32, #tpu.memory_space<vmem>>, vector<3x16x16xf32>
    %c0_2 = arith.constant 0 : index
    %c0_3 = arith.constant 0 : index
    %c0_4 = arith.constant 0 : index
    %1 = vector.load %arg2[%c0_2, %c0_3, %c0_4] : memref<3x16x16xf32, #tpu.memory_space<vmem>>, vector<3x16x16xf32>
    %2 = vector.extract_strided_slice %0 {offsets = [0, 0, 0], sizes = [3, 6, 16], strides = [1, 1, 1]} : vector<3x16x16xf32> to vector<3x6x16xf32>
    %cst = arith.constant 0.00102838036 : f32
    %3 = vector.broadcast %cst : f32 to vector<3x6x16xf32>
    %4 = arith.mulf %3, %2 : vector<3x6x16xf32>
    %5 = vector.extract_strided_slice %0 {offsets = [0, 1, 0], sizes = [3, 6, 16], strides = [1, 1, 1]} : vector<3x16x16xf32> to vector<3x6x16xf32>
    %cst_5 = arith.constant 0.00759875868 : f32
    %6 = vector.broadcast %cst_5 : f32 to vector<3x6x16xf32>
    %7 = arith.mulf %6, %5 : vector<3x6x16xf32>
    %8 = arith.addf %4, %7 : vector<3x6x16xf32>
    %9 = vector.extract_strided_slice %0 {offsets = [0, 2, 0], sizes = [3, 6, 16], strides = [1, 1, 1]} : vector<3x16x16xf32> to vector<3x6x16xf32>
    %cst_6 = arith.constant 0.0360007733 : f32
    %10 = vector.broadcast %cst_6 : f32 to vector<3x6x16xf32>
    %11 = arith.mulf %10, %9 : vector<3x6x16xf32>
    %12 = arith.addf %8, %11 : vector<3x6x16xf32>
    %13 = vector.extract_strided_slice %0 {offsets = [0, 3, 0], sizes = [3, 6, 16], strides = [1, 1, 1]} : vector<3x16x16xf32> to vector<3x6x16xf32>
    %cst_7 = arith.constant 0.109360702 : f32
    %14 = vector.broadcast %cst_7 : f32 to vector<3x6x16xf32>
    %15 = arith.mulf %14, %13 : vector<3x6x16xf32>
    %16 = arith.addf %12, %15 : vector<3x6x16xf32>
    %17 = vector.extract_strided_slice %0 {offsets = [0, 4, 0], sizes = [3, 6, 16], strides = [1, 1, 1]} : vector<3x16x16xf32> to vector<3x6x16xf32>
    %cst_8 = arith.constant 0.213005543 : f32
    %18 = vector.broadcast %cst_8 : f32 to vector<3x6x16xf32>
    %19 = arith.mulf %18, %17 : vector<3x6x16xf32>
    %20 = arith.addf %16, %19 : vector<3x6x16xf32>
    %21 = vector.extract_strided_slice %0 {offsets = [0, 5, 0], sizes = [3, 6, 16], strides = [1, 1, 1]} : vector<3x16x16xf32> to vector<3x6x16xf32>
    %cst_9 = arith.constant 0.266011745 : f32
    %22 = vector.broadcast %cst_9 : f32 to vector<3x6x16xf32>
    %23 = arith.mulf %22, %21 : vector<3x6x16xf32>
    %24 = arith.addf %20, %23 : vector<3x6x16xf32>
    %25 = vector.extract_strided_slice %0 {offsets = [0, 6, 0], sizes = [3, 6, 16], strides = [1, 1, 1]} : vector<3x16x16xf32> to vector<3x6x16xf32>
    %cst_10 = arith.constant 0.213005543 : f32
    %26 = vector.broadcast %cst_10 : f32 to vector<3x6x16xf32>
    %27 = arith.mulf %26, %25 : vector<3x6x16xf32>
    %28 = arith.addf %24, %27 : vector<3x6x16xf32>
    %29 = vector.extract_strided_slice %0 {offsets = [0, 7, 0], sizes = [3, 6, 16], strides = [1, 1, 1]} : vector<3x16x16xf32> to vector<3x6x16xf32>
    %cst_11 = arith.constant 0.109360702 : f32
    %30 = vector.broadcast %cst_11 : f32 to vector<3x6x16xf32>
    %31 = arith.mulf %30, %29 : vector<3x6x16xf32>
    %32 = arith.addf %28, %31 : vector<3x6x16xf32>
    %33 = vector.extract_strided_slice %0 {offsets = [0, 8, 0], sizes = [3, 6, 16], strides = [1, 1, 1]} : vector<3x16x16xf32> to vector<3x6x16xf32>
    %cst_12 = arith.constant 0.0360007733 : f32
    %34 = vector.broadcast %cst_12 : f32 to vector<3x6x16xf32>
    %35 = arith.mulf %34, %33 : vector<3x6x16xf32>
    %36 = arith.addf %32, %35 : vector<3x6x16xf32>
    %37 = vector.extract_strided_slice %0 {offsets = [0, 9, 0], sizes = [3, 6, 16], strides = [1, 1, 1]} : vector<3x16x16xf32> to vector<3x6x16xf32>
    %cst_13 = arith.constant 0.00759875868 : f32
    %38 = vector.broadcast %cst_13 : f32 to vector<3x6x16xf32>
    %39 = arith.mulf %38, %37 : vector<3x6x16xf32>
    %40 = arith.addf %36, %39 : vector<3x6x16xf32>
    %41 = vector.extract_strided_slice %0 {offsets = [0, 10, 0], sizes = [3, 6, 16], strides = [1, 1, 1]} : vector<3x16x16xf32> to vector<3x6x16xf32>
    %cst_14 = arith.constant 0.00102838036 : f32
    %42 = vector.broadcast %cst_14 : f32 to vector<3x6x16xf32>
    %43 = arith.mulf %42, %41 : vector<3x6x16xf32>
    %44 = arith.addf %40, %43 : vector<3x6x16xf32>
    %45 = vector.extract_strided_slice %44 {offsets = [0, 0, 0], sizes = [3, 6, 6], strides = [1, 1, 1]} : vector<3x6x16xf32> to vector<3x6x6xf32>
    %cst_15 = arith.constant 0.00102838036 : f32
    %46 = vector.broadcast %cst_15 : f32 to vector<3x6x6xf32>
    %47 = arith.mulf %46, %45 : vector<3x6x6xf32>
    %48 = vector.extract_strided_slice %44 {offsets = [0, 0, 1], sizes = [3, 6, 6], strides = [1, 1, 1]} : vector<3x6x16xf32> to vector<3x6x6xf32>
    %cst_16 = arith.constant 0.00759875868 : f32
    %49 = vector.broadcast %cst_16 : f32 to vector<3x6x6xf32>
    %50 = arith.mulf %49, %48 : vector<3x6x6xf32>
    %51 = arith.addf %47, %50 : vector<3x6x6xf32>
    %52 = vector.extract_strided_slice %44 {offsets = [0, 0, 2], sizes = [3, 6, 6], strides = [1, 1, 1]} : vector<3x6x16xf32> to vector<3x6x6xf32>
    %cst_17 = arith.constant 0.0360007733 : f32
    %53 = vector.broadcast %cst_17 : f32 to vector<3x6x6xf32>
    %54 = arith.mulf %53, %52 : vector<3x6x6xf32>
    %55 = arith.addf %51, %54 : vector<3x6x6xf32>
    %56 = vector.extract_strided_slice %44 {offsets = [0, 0, 3], sizes = [3, 6, 6], strides = [1, 1, 1]} : vector<3x6x16xf32> to vector<3x6x6xf32>
    %cst_18 = arith.constant 0.109360702 : f32
    %57 = vector.broadcast %cst_18 : f32 to vector<3x6x6xf32>
    %58 = arith.mulf %57, %56 : vector<3x6x6xf32>
    %59 = arith.addf %55, %58 : vector<3x6x6xf32>
    %60 = vector.extract_strided_slice %44 {offsets = [0, 0, 4], sizes = [3, 6, 6], strides = [1, 1, 1]} : vector<3x6x16xf32> to vector<3x6x6xf32>
    %cst_19 = arith.constant 0.213005543 : f32
    %61 = vector.broadcast %cst_19 : f32 to vector<3x6x6xf32>
    %62 = arith.mulf %61, %60 : vector<3x6x6xf32>
    %63 = arith.addf %59, %62 : vector<3x6x6xf32>
    %64 = vector.extract_strided_slice %44 {offsets = [0, 0, 5], sizes = [3, 6, 6], strides = [1, 1, 1]} : vector<3x6x16xf32> to vector<3x6x6xf32>
    %cst_20 = arith.constant 0.266011745 : f32
    %65 = vector.broadcast %cst_20 : f32 to vector<3x6x6xf32>
    %66 = arith.mulf %65, %64 : vector<3x6x6xf32>
    %67 = arith.addf %63, %66 : vector<3x6x6xf32>
    %68 = vector.extract_strided_slice %44 {offsets = [0, 0, 6], sizes = [3, 6, 6], strides = [1, 1, 1]} : vector<3x6x16xf32> to vector<3x6x6xf32>
    %cst_21 = arith.constant 0.213005543 : f32
    %69 = vector.broadcast %cst_21 : f32 to vector<3x6x6xf32>
    %70 = arith.mulf %69, %68 : vector<3x6x6xf32>
    %71 = arith.addf %67, %70 : vector<3x6x6xf32>
    %72 = vector.extract_strided_slice %44 {offsets = [0, 0, 7], sizes = [3, 6, 6], strides = [1, 1, 1]} : vector<3x6x16xf32> to vector<3x6x6xf32>
    %cst_22 = arith.constant 0.109360702 : f32
    %73 = vector.broadcast %cst_22 : f32 to vector<3x6x6xf32>
    %74 = arith.mulf %73, %72 : vector<3x6x6xf32>
    %75 = arith.addf %71, %74 : vector<3x6x6xf32>
    %76 = vector.extract_strided_slice %44 {offsets = [0, 0, 8], sizes = [3, 6, 6], strides = [1, 1, 1]} : vector<3x6x16xf32> to vector<3x6x6xf32>
    %cst_23 = arith.constant 0.0360007733 : f32
    %77 = vector.broadcast %cst_23 : f32 to vector<3x6x6xf32>
    %78 = arith.mulf %77, %76 : vector<3x6x6xf32>
    %79 = arith.addf %75, %78 : vector<3x6x6xf32>
    %80 = vector.extract_strided_slice %44 {offsets = [0, 0, 9], sizes = [3, 6, 6], strides = [1, 1, 1]} : vector<3x6x16xf32> to vector<3x6x6xf32>
    %cst_24 = arith.constant 0.00759875868 : f32
    %81 = vector.broadcast %cst_24 : f32 to vector<3x6x6xf32>
    %82 = arith.mulf %81, %80 : vector<3x6x6xf32>
    %83 = arith.addf %79, %82 : vector<3x6x6xf32>
    %84 = vector.extract_strided_slice %44 {offsets = [0, 0, 10], sizes = [3, 6, 6], strides = [1, 1, 1]} : vector<3x6x16xf32> to vector<3x6x6xf32>
    %cst_25 = arith.constant 0.00102838036 : f32
    %85 = vector.broadcast %cst_25 : f32 to vector<3x6x6xf32>
    %86 = arith.mulf %85, %84 : vector<3x6x6xf32>
    %87 = arith.addf %83, %86 : vector<3x6x6xf32>
    %88 = vector.extract_strided_slice %1 {offsets = [0, 0, 0], sizes = [3, 6, 16], strides = [1, 1, 1]} : vector<3x16x16xf32> to vector<3x6x16xf32>
    %cst_26 = arith.constant 0.00102838036 : f32
    %89 = vector.broadcast %cst_26 : f32 to vector<3x6x16xf32>
    %90 = arith.mulf %89, %88 : vector<3x6x16xf32>
    %91 = vector.extract_strided_slice %1 {offsets = [0, 1, 0], sizes = [3, 6, 16], strides = [1, 1, 1]} : vector<3x16x16xf32> to vector<3x6x16xf32>
    %cst_27 = arith.constant 0.00759875868 : f32
    %92 = vector.broadcast %cst_27 : f32 to vector<3x6x16xf32>
    %93 = arith.mulf %92, %91 : vector<3x6x16xf32>
    %94 = arith.addf %90, %93 : vector<3x6x16xf32>
    %95 = vector.extract_strided_slice %1 {offsets = [0, 2, 0], sizes = [3, 6, 16], strides = [1, 1, 1]} : vector<3x16x16xf32> to vector<3x6x16xf32>
    %cst_28 = arith.constant 0.0360007733 : f32
    %96 = vector.broadcast %cst_28 : f32 to vector<3x6x16xf32>
    %97 = arith.mulf %96, %95 : vector<3x6x16xf32>
    %98 = arith.addf %94, %97 : vector<3x6x16xf32>
    %99 = vector.extract_strided_slice %1 {offsets = [0, 3, 0], sizes = [3, 6, 16], strides = [1, 1, 1]} : vector<3x16x16xf32> to vector<3x6x16xf32>
    %cst_29 = arith.constant 0.109360702 : f32
    %100 = vector.broadcast %cst_29 : f32 to vector<3x6x16xf32>
    %101 = arith.mulf %100, %99 : vector<3x6x16xf32>
    %102 = arith.addf %98, %101 : vector<3x6x16xf32>
    %103 = vector.extract_strided_slice %1 {offsets = [0, 4, 0], sizes = [3, 6, 16], strides = [1, 1, 1]} : vector<3x16x16xf32> to vector<3x6x16xf32>
    %cst_30 = arith.constant 0.213005543 : f32
    %104 = vector.broadcast %cst_30 : f32 to vector<3x6x16xf32>
    %105 = arith.mulf %104, %103 : vector<3x6x16xf32>
    %106 = arith.addf %102, %105 : vector<3x6x16xf32>
    %107 = vector.extract_strided_slice %1 {offsets = [0, 5, 0], sizes = [3, 6, 16], strides = [1, 1, 1]} : vector<3x16x16xf32> to vector<3x6x16xf32>
    %cst_31 = arith.constant 0.266011745 : f32
    %108 = vector.broadcast %cst_31 : f32 to vector<3x6x16xf32>
    %109 = arith.mulf %108, %107 : vector<3x6x16xf32>
    %110 = arith.addf %106, %109 : vector<3x6x16xf32>
    %111 = vector.extract_strided_slice %1 {offsets = [0, 6, 0], sizes = [3, 6, 16], strides = [1, 1, 1]} : vector<3x16x16xf32> to vector<3x6x16xf32>
    %cst_32 = arith.constant 0.213005543 : f32
    %112 = vector.broadcast %cst_32 : f32 to vector<3x6x16xf32>
    %113 = arith.mulf %112, %111 : vector<3x6x16xf32>
    %114 = arith.addf %110, %113 : vector<3x6x16xf32>
    %115 = vector.extract_strided_slice %1 {offsets = [0, 7, 0], sizes = [3, 6, 16], strides = [1, 1, 1]} : vector<3x16x16xf32> to vector<3x6x16xf32>
    %cst_33 = arith.constant 0.109360702 : f32
    %116 = vector.broadcast %cst_33 : f32 to vector<3x6x16xf32>
    %117 = arith.mulf %116, %115 : vector<3x6x16xf32>
    %118 = arith.addf %114, %117 : vector<3x6x16xf32>
    %119 = vector.extract_strided_slice %1 {offsets = [0, 8, 0], sizes = [3, 6, 16], strides = [1, 1, 1]} : vector<3x16x16xf32> to vector<3x6x16xf32>
    %cst_34 = arith.constant 0.0360007733 : f32
    %120 = vector.broadcast %cst_34 : f32 to vector<3x6x16xf32>
    %121 = arith.mulf %120, %119 : vector<3x6x16xf32>
    %122 = arith.addf %118, %121 : vector<3x6x16xf32>
    %123 = vector.extract_strided_slice %1 {offsets = [0, 9, 0], sizes = [3, 6, 16], strides = [1, 1, 1]} : vector<3x16x16xf32> to vector<3x6x16xf32>
    %cst_35 = arith.constant 0.00759875868 : f32
    %124 = vector.broadcast %cst_35 : f32 to vector<3x6x16xf32>
    %125 = arith.mulf %124, %123 : vector<3x6x16xf32>
    %126 = arith.addf %122, %125 : vector<3x6x16xf32>
    %127 = vector.extract_strided_slice %1 {offsets = [0, 10, 0], sizes = [3, 6, 16], strides = [1, 1, 1]} : vector<3x16x16xf32> to vector<3x6x16xf32>
    %cst_36 = arith.constant 0.00102838036 : f32
    %128 = vector.broadcast %cst_36 : f32 to vector<3x6x16xf32>
    %129 = arith.mulf %128, %127 : vector<3x6x16xf32>
    %130 = arith.addf %126, %129 : vector<3x6x16xf32>
    %131 = vector.extract_strided_slice %130 {offsets = [0, 0, 0], sizes = [3, 6, 6], strides = [1, 1, 1]} : vector<3x6x16xf32> to vector<3x6x6xf32>
    %cst_37 = arith.constant 0.00102838036 : f32
    %132 = vector.broadcast %cst_37 : f32 to vector<3x6x6xf32>
    %133 = arith.mulf %132, %131 : vector<3x6x6xf32>
    %134 = vector.extract_strided_slice %130 {offsets = [0, 0, 1], sizes = [3, 6, 6], strides = [1, 1, 1]} : vector<3x6x16xf32> to vector<3x6x6xf32>
    %cst_38 = arith.constant 0.00759875868 : f32
    %135 = vector.broadcast %cst_38 : f32 to vector<3x6x6xf32>
    %136 = arith.mulf %135, %134 : vector<3x6x6xf32>
    %137 = arith.addf %133, %136 : vector<3x6x6xf32>
    %138 = vector.extract_strided_slice %130 {offsets = [0, 0, 2], sizes = [3, 6, 6], strides = [1, 1, 1]} : vector<3x6x16xf32> to vector<3x6x6xf32>
    %cst_39 = arith.constant 0.0360007733 : f32
    %139 = vector.broadcast %cst_39 : f32 to vector<3x6x6xf32>
    %140 = arith.mulf %139, %138 : vector<3x6x6xf32>
    %141 = arith.addf %137, %140 : vector<3x6x6xf32>
    %142 = vector.extract_strided_slice %130 {offsets = [0, 0, 3], sizes = [3, 6, 6], strides = [1, 1, 1]} : vector<3x6x16xf32> to vector<3x6x6xf32>
    %cst_40 = arith.constant 0.109360702 : f32
    %143 = vector.broadcast %cst_40 : f32 to vector<3x6x6xf32>
    %144 = arith.mulf %143, %142 : vector<3x6x6xf32>
    %145 = arith.addf %141, %144 : vector<3x6x6xf32>
    %146 = vector.extract_strided_slice %130 {offsets = [0, 0, 4], sizes = [3, 6, 6], strides = [1, 1, 1]} : vector<3x6x16xf32> to vector<3x6x6xf32>
    %cst_41 = arith.constant 0.213005543 : f32
    %147 = vector.broadcast %cst_41 : f32 to vector<3x6x6xf32>
    %148 = arith.mulf %147, %146 : vector<3x6x6xf32>
    %149 = arith.addf %145, %148 : vector<3x6x6xf32>
    %150 = vector.extract_strided_slice %130 {offsets = [0, 0, 5], sizes = [3, 6, 6], strides = [1, 1, 1]} : vector<3x6x16xf32> to vector<3x6x6xf32>
    %cst_42 = arith.constant 0.266011745 : f32
    %151 = vector.broadcast %cst_42 : f32 to vector<3x6x6xf32>
    %152 = arith.mulf %151, %150 : vector<3x6x6xf32>
    %153 = arith.addf %149, %152 : vector<3x6x6xf32>
    %154 = vector.extract_strided_slice %130 {offsets = [0, 0, 6], sizes = [3, 6, 6], strides = [1, 1, 1]} : vector<3x6x16xf32> to vector<3x6x6xf32>
    %cst_43 = arith.constant 0.213005543 : f32
    %155 = vector.broadcast %cst_43 : f32 to vector<3x6x6xf32>
    %156 = arith.mulf %155, %154 : vector<3x6x6xf32>
    %157 = arith.addf %153, %156 : vector<3x6x6xf32>
    %158 = vector.extract_strided_slice %130 {offsets = [0, 0, 7], sizes = [3, 6, 6], strides = [1, 1, 1]} : vector<3x6x16xf32> to vector<3x6x6xf32>
    %cst_44 = arith.constant 0.109360702 : f32
    %159 = vector.broadcast %cst_44 : f32 to vector<3x6x6xf32>
    %160 = arith.mulf %159, %158 : vector<3x6x6xf32>
    %161 = arith.addf %157, %160 : vector<3x6x6xf32>
    %162 = vector.extract_strided_slice %130 {offsets = [0, 0, 8], sizes = [3, 6, 6], strides = [1, 1, 1]} : vector<3x6x16xf32> to vector<3x6x6xf32>
    %cst_45 = arith.constant 0.0360007733 : f32
    %163 = vector.broadcast %cst_45 : f32 to vector<3x6x6xf32>
    %164 = arith.mulf %163, %162 : vector<3x6x6xf32>
    %165 = arith.addf %161, %164 : vector<3x6x6xf32>
    %166 = vector.extract_strided_slice %130 {offsets = [0, 0, 9], sizes = [3, 6, 6], strides = [1, 1, 1]} : vector<3x6x16xf32> to vector<3x6x6xf32>
    %cst_46 = arith.constant 0.00759875868 : f32
    %167 = vector.broadcast %cst_46 : f32 to vector<3x6x6xf32>
    %168 = arith.mulf %167, %166 : vector<3x6x6xf32>
    %169 = arith.addf %165, %168 : vector<3x6x6xf32>
    %170 = vector.extract_strided_slice %130 {offsets = [0, 0, 10], sizes = [3, 6, 6], strides = [1, 1, 1]} : vector<3x6x16xf32> to vector<3x6x6xf32>
    %cst_47 = arith.constant 0.00102838036 : f32
    %171 = vector.broadcast %cst_47 : f32 to vector<3x6x6xf32>
    %172 = arith.mulf %171, %170 : vector<3x6x6xf32>
    %173 = arith.addf %169, %172 : vector<3x6x6xf32>
    %174 = arith.mulf %0, %0 : vector<3x16x16xf32>
    %175 = vector.extract_strided_slice %174 {offsets = [0, 0, 0], sizes = [3, 6, 16], strides = [1, 1, 1]} : vector<3x16x16xf32> to vector<3x6x16xf32>
    %cst_48 = arith.constant 0.00102838036 : f32
    %176 = vector.broadcast %cst_48 : f32 to vector<3x6x16xf32>
    %177 = arith.mulf %176, %175 : vector<3x6x16xf32>
    %178 = vector.extract_strided_slice %174 {offsets = [0, 1, 0], sizes = [3, 6, 16], strides = [1, 1, 1]} : vector<3x16x16xf32> to vector<3x6x16xf32>
    %cst_49 = arith.constant 0.00759875868 : f32
    %179 = vector.broadcast %cst_49 : f32 to vector<3x6x16xf32>
    %180 = arith.mulf %179, %178 : vector<3x6x16xf32>
    %181 = arith.addf %177, %180 : vector<3x6x16xf32>
    %182 = vector.extract_strided_slice %174 {offsets = [0, 2, 0], sizes = [3, 6, 16], strides = [1, 1, 1]} : vector<3x16x16xf32> to vector<3x6x16xf32>
    %cst_50 = arith.constant 0.0360007733 : f32
    %183 = vector.broadcast %cst_50 : f32 to vector<3x6x16xf32>
    %184 = arith.mulf %183, %182 : vector<3x6x16xf32>
    %185 = arith.addf %181, %184 : vector<3x6x16xf32>
    %186 = vector.extract_strided_slice %174 {offsets = [0, 3, 0], sizes = [3, 6, 16], strides = [1, 1, 1]} : vector<3x16x16xf32> to vector<3x6x16xf32>
    %cst_51 = arith.constant 0.109360702 : f32
    %187 = vector.broadcast %cst_51 : f32 to vector<3x6x16xf32>
    %188 = arith.mulf %187, %186 : vector<3x6x16xf32>
    %189 = arith.addf %185, %188 : vector<3x6x16xf32>
    %190 = vector.extract_strided_slice %174 {offsets = [0, 4, 0], sizes = [3, 6, 16], strides = [1, 1, 1]} : vector<3x16x16xf32> to vector<3x6x16xf32>
    %cst_52 = arith.constant 0.213005543 : f32
    %191 = vector.broadcast %cst_52 : f32 to vector<3x6x16xf32>
    %192 = arith.mulf %191, %190 : vector<3x6x16xf32>
    %193 = arith.addf %189, %192 : vector<3x6x16xf32>
    %194 = vector.extract_strided_slice %174 {offsets = [0, 5, 0], sizes = [3, 6, 16], strides = [1, 1, 1]} : vector<3x16x16xf32> to vector<3x6x16xf32>
    %cst_53 = arith.constant 0.266011745 : f32
    %195 = vector.broadcast %cst_53 : f32 to vector<3x6x16xf32>
    %196 = arith.mulf %195, %194 : vector<3x6x16xf32>
    %197 = arith.addf %193, %196 : vector<3x6x16xf32>
    %198 = vector.extract_strided_slice %174 {offsets = [0, 6, 0], sizes = [3, 6, 16], strides = [1, 1, 1]} : vector<3x16x16xf32> to vector<3x6x16xf32>
    %cst_54 = arith.constant 0.213005543 : f32
    %199 = vector.broadcast %cst_54 : f32 to vector<3x6x16xf32>
    %200 = arith.mulf %199, %198 : vector<3x6x16xf32>
    %201 = arith.addf %197, %200 : vector<3x6x16xf32>
    %202 = vector.extract_strided_slice %174 {offsets = [0, 7, 0], sizes = [3, 6, 16], strides = [1, 1, 1]} : vector<3x16x16xf32> to vector<3x6x16xf32>
    %cst_55 = arith.constant 0.109360702 : f32
    %203 = vector.broadcast %cst_55 : f32 to vector<3x6x16xf32>
    %204 = arith.mulf %203, %202 : vector<3x6x16xf32>
    %205 = arith.addf %201, %204 : vector<3x6x16xf32>
    %206 = vector.extract_strided_slice %174 {offsets = [0, 8, 0], sizes = [3, 6, 16], strides = [1, 1, 1]} : vector<3x16x16xf32> to vector<3x6x16xf32>
    %cst_56 = arith.constant 0.0360007733 : f32
    %207 = vector.broadcast %cst_56 : f32 to vector<3x6x16xf32>
    %208 = arith.mulf %207, %206 : vector<3x6x16xf32>
    %209 = arith.addf %205, %208 : vector<3x6x16xf32>
    %210 = vector.extract_strided_slice %174 {offsets = [0, 9, 0], sizes = [3, 6, 16], strides = [1, 1, 1]} : vector<3x16x16xf32> to vector<3x6x16xf32>
    %cst_57 = arith.constant 0.00759875868 : f32
    %211 = vector.broadcast %cst_57 : f32 to vector<3x6x16xf32>
    %212 = arith.mulf %211, %210 : vector<3x6x16xf32>
    %213 = arith.addf %209, %212 : vector<3x6x16xf32>
    %214 = vector.extract_strided_slice %174 {offsets = [0, 10, 0], sizes = [3, 6, 16], strides = [1, 1, 1]} : vector<3x16x16xf32> to vector<3x6x16xf32>
    %cst_58 = arith.constant 0.00102838036 : f32
    %215 = vector.broadcast %cst_58 : f32 to vector<3x6x16xf32>
    %216 = arith.mulf %215, %214 : vector<3x6x16xf32>
    %217 = arith.addf %213, %216 : vector<3x6x16xf32>
    %218 = vector.extract_strided_slice %217 {offsets = [0, 0, 0], sizes = [3, 6, 6], strides = [1, 1, 1]} : vector<3x6x16xf32> to vector<3x6x6xf32>
    %cst_59 = arith.constant 0.00102838036 : f32
    %219 = vector.broadcast %cst_59 : f32 to vector<3x6x6xf32>
    %220 = arith.mulf %219, %218 : vector<3x6x6xf32>
    %221 = vector.extract_strided_slice %217 {offsets = [0, 0, 1], sizes = [3, 6, 6], strides = [1, 1, 1]} : vector<3x6x16xf32> to vector<3x6x6xf32>
    %cst_60 = arith.constant 0.00759875868 : f32
    %222 = vector.broadcast %cst_60 : f32 to vector<3x6x6xf32>
    %223 = arith.mulf %222, %221 : vector<3x6x6xf32>
    %224 = arith.addf %220, %223 : vector<3x6x6xf32>
    %225 = vector.extract_strided_slice %217 {offsets = [0, 0, 2], sizes = [3, 6, 6], strides = [1, 1, 1]} : vector<3x6x16xf32> to vector<3x6x6xf32>
    %cst_61 = arith.constant 0.0360007733 : f32
    %226 = vector.broadcast %cst_61 : f32 to vector<3x6x6xf32>
    %227 = arith.mulf %226, %225 : vector<3x6x6xf32>
    %228 = arith.addf %224, %227 : vector<3x6x6xf32>
    %229 = vector.extract_strided_slice %217 {offsets = [0, 0, 3], sizes = [3, 6, 6], strides = [1, 1, 1]} : vector<3x6x16xf32> to vector<3x6x6xf32>
    %cst_62 = arith.constant 0.109360702 : f32
    %230 = vector.broadcast %cst_62 : f32 to vector<3x6x6xf32>
    %231 = arith.mulf %230, %229 : vector<3x6x6xf32>
    %232 = arith.addf %228, %231 : vector<3x6x6xf32>
    %233 = vector.extract_strided_slice %217 {offsets = [0, 0, 4], sizes = [3, 6, 6], strides = [1, 1, 1]} : vector<3x6x16xf32> to vector<3x6x6xf32>
    %cst_63 = arith.constant 0.213005543 : f32
    %234 = vector.broadcast %cst_63 : f32 to vector<3x6x6xf32>
    %235 = arith.mulf %234, %233 : vector<3x6x6xf32>
    %236 = arith.addf %232, %235 : vector<3x6x6xf32>
    %237 = vector.extract_strided_slice %217 {offsets = [0, 0, 5], sizes = [3, 6, 6], strides = [1, 1, 1]} : vector<3x6x16xf32> to vector<3x6x6xf32>
    %cst_64 = arith.constant 0.266011745 : f32
    %238 = vector.broadcast %cst_64 : f32 to vector<3x6x6xf32>
    %239 = arith.mulf %238, %237 : vector<3x6x6xf32>
    %240 = arith.addf %236, %239 : vector<3x6x6xf32>
    %241 = vector.extract_strided_slice %217 {offsets = [0, 0, 6], sizes = [3, 6, 6], strides = [1, 1, 1]} : vector<3x6x16xf32> to vector<3x6x6xf32>
    %cst_65 = arith.constant 0.213005543 : f32
    %242 = vector.broadcast %cst_65 : f32 to vector<3x6x6xf32>
    %243 = arith.mulf %242, %241 : vector<3x6x6xf32>
    %244 = arith.addf %240, %243 : vector<3x6x6xf32>
    %245 = vector.extract_strided_slice %217 {offsets = [0, 0, 7], sizes = [3, 6, 6], strides = [1, 1, 1]} : vector<3x6x16xf32> to vector<3x6x6xf32>
    %cst_66 = arith.constant 0.109360702 : f32
    %246 = vector.broadcast %cst_66 : f32 to vector<3x6x6xf32>
    %247 = arith.mulf %246, %245 : vector<3x6x6xf32>
    %248 = arith.addf %244, %247 : vector<3x6x6xf32>
    %249 = vector.extract_strided_slice %217 {offsets = [0, 0, 8], sizes = [3, 6, 6], strides = [1, 1, 1]} : vector<3x6x16xf32> to vector<3x6x6xf32>
    %cst_67 = arith.constant 0.0360007733 : f32
    %250 = vector.broadcast %cst_67 : f32 to vector<3x6x6xf32>
    %251 = arith.mulf %250, %249 : vector<3x6x6xf32>
    %252 = arith.addf %248, %251 : vector<3x6x6xf32>
    %253 = vector.extract_strided_slice %217 {offsets = [0, 0, 9], sizes = [3, 6, 6], strides = [1, 1, 1]} : vector<3x6x16xf32> to vector<3x6x6xf32>
    %cst_68 = arith.constant 0.00759875868 : f32
    %254 = vector.broadcast %cst_68 : f32 to vector<3x6x6xf32>
    %255 = arith.mulf %254, %253 : vector<3x6x6xf32>
    %256 = arith.addf %252, %255 : vector<3x6x6xf32>
    %257 = vector.extract_strided_slice %217 {offsets = [0, 0, 10], sizes = [3, 6, 6], strides = [1, 1, 1]} : vector<3x6x16xf32> to vector<3x6x6xf32>
    %cst_69 = arith.constant 0.00102838036 : f32
    %258 = vector.broadcast %cst_69 : f32 to vector<3x6x6xf32>
    %259 = arith.mulf %258, %257 : vector<3x6x6xf32>
    %260 = arith.addf %256, %259 : vector<3x6x6xf32>
    %261 = arith.mulf %1, %1 : vector<3x16x16xf32>
    %262 = vector.extract_strided_slice %261 {offsets = [0, 0, 0], sizes = [3, 6, 16], strides = [1, 1, 1]} : vector<3x16x16xf32> to vector<3x6x16xf32>
    %cst_70 = arith.constant 0.00102838036 : f32
    %263 = vector.broadcast %cst_70 : f32 to vector<3x6x16xf32>
    %264 = arith.mulf %263, %262 : vector<3x6x16xf32>
    %265 = vector.extract_strided_slice %261 {offsets = [0, 1, 0], sizes = [3, 6, 16], strides = [1, 1, 1]} : vector<3x16x16xf32> to vector<3x6x16xf32>
    %cst_71 = arith.constant 0.00759875868 : f32
    %266 = vector.broadcast %cst_71 : f32 to vector<3x6x16xf32>
    %267 = arith.mulf %266, %265 : vector<3x6x16xf32>
    %268 = arith.addf %264, %267 : vector<3x6x16xf32>
    %269 = vector.extract_strided_slice %261 {offsets = [0, 2, 0], sizes = [3, 6, 16], strides = [1, 1, 1]} : vector<3x16x16xf32> to vector<3x6x16xf32>
    %cst_72 = arith.constant 0.0360007733 : f32
    %270 = vector.broadcast %cst_72 : f32 to vector<3x6x16xf32>
    %271 = arith.mulf %270, %269 : vector<3x6x16xf32>
    %272 = arith.addf %268, %271 : vector<3x6x16xf32>
    %273 = vector.extract_strided_slice %261 {offsets = [0, 3, 0], sizes = [3, 6, 16], strides = [1, 1, 1]} : vector<3x16x16xf32> to vector<3x6x16xf32>
    %cst_73 = arith.constant 0.109360702 : f32
    %274 = vector.broadcast %cst_73 : f32 to vector<3x6x16xf32>
    %275 = arith.mulf %274, %273 : vector<3x6x16xf32>
    %276 = arith.addf %272, %275 : vector<3x6x16xf32>
    %277 = vector.extract_strided_slice %261 {offsets = [0, 4, 0], sizes = [3, 6, 16], strides = [1, 1, 1]} : vector<3x16x16xf32> to vector<3x6x16xf32>
    %cst_74 = arith.constant 0.213005543 : f32
    %278 = vector.broadcast %cst_74 : f32 to vector<3x6x16xf32>
    %279 = arith.mulf %278, %277 : vector<3x6x16xf32>
    %280 = arith.addf %276, %279 : vector<3x6x16xf32>
    %281 = vector.extract_strided_slice %261 {offsets = [0, 5, 0], sizes = [3, 6, 16], strides = [1, 1, 1]} : vector<3x16x16xf32> to vector<3x6x16xf32>
    %cst_75 = arith.constant 0.266011745 : f32
    %282 = vector.broadcast %cst_75 : f32 to vector<3x6x16xf32>
    %283 = arith.mulf %282, %281 : vector<3x6x16xf32>
    %284 = arith.addf %280, %283 : vector<3x6x16xf32>
    %285 = vector.extract_strided_slice %261 {offsets = [0, 6, 0], sizes = [3, 6, 16], strides = [1, 1, 1]} : vector<3x16x16xf32> to vector<3x6x16xf32>
    %cst_76 = arith.constant 0.213005543 : f32
    %286 = vector.broadcast %cst_76 : f32 to vector<3x6x16xf32>
    %287 = arith.mulf %286, %285 : vector<3x6x16xf32>
    %288 = arith.addf %284, %287 : vector<3x6x16xf32>
    %289 = vector.extract_strided_slice %261 {offsets = [0, 7, 0], sizes = [3, 6, 16], strides = [1, 1, 1]} : vector<3x16x16xf32> to vector<3x6x16xf32>
    %cst_77 = arith.constant 0.109360702 : f32
    %290 = vector.broadcast %cst_77 : f32 to vector<3x6x16xf32>
    %291 = arith.mulf %290, %289 : vector<3x6x16xf32>
    %292 = arith.addf %288, %291 : vector<3x6x16xf32>
    %293 = vector.extract_strided_slice %261 {offsets = [0, 8, 0], sizes = [3, 6, 16], strides = [1, 1, 1]} : vector<3x16x16xf32> to vector<3x6x16xf32>
    %cst_78 = arith.constant 0.0360007733 : f32
    %294 = vector.broadcast %cst_78 : f32 to vector<3x6x16xf32>
    %295 = arith.mulf %294, %293 : vector<3x6x16xf32>
    %296 = arith.addf %292, %295 : vector<3x6x16xf32>
    %297 = vector.extract_strided_slice %261 {offsets = [0, 9, 0], sizes = [3, 6, 16], strides = [1, 1, 1]} : vector<3x16x16xf32> to vector<3x6x16xf32>
    %cst_79 = arith.constant 0.00759875868 : f32
    %298 = vector.broadcast %cst_79 : f32 to vector<3x6x16xf32>
    %299 = arith.mulf %298, %297 : vector<3x6x16xf32>
    %300 = arith.addf %296, %299 : vector<3x6x16xf32>
    %301 = vector.extract_strided_slice %261 {offsets = [0, 10, 0], sizes = [3, 6, 16], strides = [1, 1, 1]} : vector<3x16x16xf32> to vector<3x6x16xf32>
    %cst_80 = arith.constant 0.00102838036 : f32
    %302 = vector.broadcast %cst_80 : f32 to vector<3x6x16xf32>
    %303 = arith.mulf %302, %301 : vector<3x6x16xf32>
    %304 = arith.addf %300, %303 : vector<3x6x16xf32>
    %305 = vector.extract_strided_slice %304 {offsets = [0, 0, 0], sizes = [3, 6, 6], strides = [1, 1, 1]} : vector<3x6x16xf32> to vector<3x6x6xf32>
    %cst_81 = arith.constant 0.00102838036 : f32
    %306 = vector.broadcast %cst_81 : f32 to vector<3x6x6xf32>
    %307 = arith.mulf %306, %305 : vector<3x6x6xf32>
    %308 = vector.extract_strided_slice %304 {offsets = [0, 0, 1], sizes = [3, 6, 6], strides = [1, 1, 1]} : vector<3x6x16xf32> to vector<3x6x6xf32>
    %cst_82 = arith.constant 0.00759875868 : f32
    %309 = vector.broadcast %cst_82 : f32 to vector<3x6x6xf32>
    %310 = arith.mulf %309, %308 : vector<3x6x6xf32>
    %311 = arith.addf %307, %310 : vector<3x6x6xf32>
    %312 = vector.extract_strided_slice %304 {offsets = [0, 0, 2], sizes = [3, 6, 6], strides = [1, 1, 1]} : vector<3x6x16xf32> to vector<3x6x6xf32>
    %cst_83 = arith.constant 0.0360007733 : f32
    %313 = vector.broadcast %cst_83 : f32 to vector<3x6x6xf32>
    %314 = arith.mulf %313, %312 : vector<3x6x6xf32>
    %315 = arith.addf %311, %314 : vector<3x6x6xf32>
    %316 = vector.extract_strided_slice %304 {offsets = [0, 0, 3], sizes = [3, 6, 6], strides = [1, 1, 1]} : vector<3x6x16xf32> to vector<3x6x6xf32>
    %cst_84 = arith.constant 0.109360702 : f32
    %317 = vector.broadcast %cst_84 : f32 to vector<3x6x6xf32>
    %318 = arith.mulf %317, %316 : vector<3x6x6xf32>
    %319 = arith.addf %315, %318 : vector<3x6x6xf32>
    %320 = vector.extract_strided_slice %304 {offsets = [0, 0, 4], sizes = [3, 6, 6], strides = [1, 1, 1]} : vector<3x6x16xf32> to vector<3x6x6xf32>
    %cst_85 = arith.constant 0.213005543 : f32
    %321 = vector.broadcast %cst_85 : f32 to vector<3x6x6xf32>
    %322 = arith.mulf %321, %320 : vector<3x6x6xf32>
    %323 = arith.addf %319, %322 : vector<3x6x6xf32>
    %324 = vector.extract_strided_slice %304 {offsets = [0, 0, 5], sizes = [3, 6, 6], strides = [1, 1, 1]} : vector<3x6x16xf32> to vector<3x6x6xf32>
    %cst_86 = arith.constant 0.266011745 : f32
    %325 = vector.broadcast %cst_86 : f32 to vector<3x6x6xf32>
    %326 = arith.mulf %325, %324 : vector<3x6x6xf32>
    %327 = arith.addf %323, %326 : vector<3x6x6xf32>
    %328 = vector.extract_strided_slice %304 {offsets = [0, 0, 6], sizes = [3, 6, 6], strides = [1, 1, 1]} : vector<3x6x16xf32> to vector<3x6x6xf32>
    %cst_87 = arith.constant 0.213005543 : f32
    %329 = vector.broadcast %cst_87 : f32 to vector<3x6x6xf32>
    %330 = arith.mulf %329, %328 : vector<3x6x6xf32>
    %331 = arith.addf %327, %330 : vector<3x6x6xf32>
    %332 = vector.extract_strided_slice %304 {offsets = [0, 0, 7], sizes = [3, 6, 6], strides = [1, 1, 1]} : vector<3x6x16xf32> to vector<3x6x6xf32>
    %cst_88 = arith.constant 0.109360702 : f32
    %333 = vector.broadcast %cst_88 : f32 to vector<3x6x6xf32>
    %334 = arith.mulf %333, %332 : vector<3x6x6xf32>
    %335 = arith.addf %331, %334 : vector<3x6x6xf32>
    %336 = vector.extract_strided_slice %304 {offsets = [0, 0, 8], sizes = [3, 6, 6], strides = [1, 1, 1]} : vector<3x6x16xf32> to vector<3x6x6xf32>
    %cst_89 = arith.constant 0.0360007733 : f32
    %337 = vector.broadcast %cst_89 : f32 to vector<3x6x6xf32>
    %338 = arith.mulf %337, %336 : vector<3x6x6xf32>
    %339 = arith.addf %335, %338 : vector<3x6x6xf32>
    %340 = vector.extract_strided_slice %304 {offsets = [0, 0, 9], sizes = [3, 6, 6], strides = [1, 1, 1]} : vector<3x6x16xf32> to vector<3x6x6xf32>
    %cst_90 = arith.constant 0.00759875868 : f32
    %341 = vector.broadcast %cst_90 : f32 to vector<3x6x6xf32>
    %342 = arith.mulf %341, %340 : vector<3x6x6xf32>
    %343 = arith.addf %339, %342 : vector<3x6x6xf32>
    %344 = vector.extract_strided_slice %304 {offsets = [0, 0, 10], sizes = [3, 6, 6], strides = [1, 1, 1]} : vector<3x6x16xf32> to vector<3x6x6xf32>
    %cst_91 = arith.constant 0.00102838036 : f32
    %345 = vector.broadcast %cst_91 : f32 to vector<3x6x6xf32>
    %346 = arith.mulf %345, %344 : vector<3x6x6xf32>
    %347 = arith.addf %343, %346 : vector<3x6x6xf32>
    %348 = arith.mulf %0, %1 : vector<3x16x16xf32>
    %349 = vector.extract_strided_slice %348 {offsets = [0, 0, 0], sizes = [3, 6, 16], strides = [1, 1, 1]} : vector<3x16x16xf32> to vector<3x6x16xf32>
    %cst_92 = arith.constant 0.00102838036 : f32
    %350 = vector.broadcast %cst_92 : f32 to vector<3x6x16xf32>
    %351 = arith.mulf %350, %349 : vector<3x6x16xf32>
    %352 = vector.extract_strided_slice %348 {offsets = [0, 1, 0], sizes = [3, 6, 16], strides = [1, 1, 1]} : vector<3x16x16xf32> to vector<3x6x16xf32>
    %cst_93 = arith.constant 0.00759875868 : f32
    %353 = vector.broadcast %cst_93 : f32 to vector<3x6x16xf32>
    %354 = arith.mulf %353, %352 : vector<3x6x16xf32>
    %355 = arith.addf %351, %354 : vector<3x6x16xf32>
    %356 = vector.extract_strided_slice %348 {offsets = [0, 2, 0], sizes = [3, 6, 16], strides = [1, 1, 1]} : vector<3x16x16xf32> to vector<3x6x16xf32>
    %cst_94 = arith.constant 0.0360007733 : f32
    %357 = vector.broadcast %cst_94 : f32 to vector<3x6x16xf32>
    %358 = arith.mulf %357, %356 : vector<3x6x16xf32>
    %359 = arith.addf %355, %358 : vector<3x6x16xf32>
    %360 = vector.extract_strided_slice %348 {offsets = [0, 3, 0], sizes = [3, 6, 16], strides = [1, 1, 1]} : vector<3x16x16xf32> to vector<3x6x16xf32>
    %cst_95 = arith.constant 0.109360702 : f32
    %361 = vector.broadcast %cst_95 : f32 to vector<3x6x16xf32>
    %362 = arith.mulf %361, %360 : vector<3x6x16xf32>
    %363 = arith.addf %359, %362 : vector<3x6x16xf32>
    %364 = vector.extract_strided_slice %348 {offsets = [0, 4, 0], sizes = [3, 6, 16], strides = [1, 1, 1]} : vector<3x16x16xf32> to vector<3x6x16xf32>
    %cst_96 = arith.constant 0.213005543 : f32
    %365 = vector.broadcast %cst_96 : f32 to vector<3x6x16xf32>
    %366 = arith.mulf %365, %364 : vector<3x6x16xf32>
    %367 = arith.addf %363, %366 : vector<3x6x16xf32>
    %368 = vector.extract_strided_slice %348 {offsets = [0, 5, 0], sizes = [3, 6, 16], strides = [1, 1, 1]} : vector<3x16x16xf32> to vector<3x6x16xf32>
    %cst_97 = arith.constant 0.266011745 : f32
    %369 = vector.broadcast %cst_97 : f32 to vector<3x6x16xf32>
    %370 = arith.mulf %369, %368 : vector<3x6x16xf32>
    %371 = arith.addf %367, %370 : vector<3x6x16xf32>
    %372 = vector.extract_strided_slice %348 {offsets = [0, 6, 0], sizes = [3, 6, 16], strides = [1, 1, 1]} : vector<3x16x16xf32> to vector<3x6x16xf32>
    %cst_98 = arith.constant 0.213005543 : f32
    %373 = vector.broadcast %cst_98 : f32 to vector<3x6x16xf32>
    %374 = arith.mulf %373, %372 : vector<3x6x16xf32>
    %375 = arith.addf %371, %374 : vector<3x6x16xf32>
    %376 = vector.extract_strided_slice %348 {offsets = [0, 7, 0], sizes = [3, 6, 16], strides = [1, 1, 1]} : vector<3x16x16xf32> to vector<3x6x16xf32>
    %cst_99 = arith.constant 0.109360702 : f32
    %377 = vector.broadcast %cst_99 : f32 to vector<3x6x16xf32>
    %378 = arith.mulf %377, %376 : vector<3x6x16xf32>
    %379 = arith.addf %375, %378 : vector<3x6x16xf32>
    %380 = vector.extract_strided_slice %348 {offsets = [0, 8, 0], sizes = [3, 6, 16], strides = [1, 1, 1]} : vector<3x16x16xf32> to vector<3x6x16xf32>
    %cst_100 = arith.constant 0.0360007733 : f32
    %381 = vector.broadcast %cst_100 : f32 to vector<3x6x16xf32>
    %382 = arith.mulf %381, %380 : vector<3x6x16xf32>
    %383 = arith.addf %379, %382 : vector<3x6x16xf32>
    %384 = vector.extract_strided_slice %348 {offsets = [0, 9, 0], sizes = [3, 6, 16], strides = [1, 1, 1]} : vector<3x16x16xf32> to vector<3x6x16xf32>
    %cst_101 = arith.constant 0.00759875868 : f32
    %385 = vector.broadcast %cst_101 : f32 to vector<3x6x16xf32>
    %386 = arith.mulf %385, %384 : vector<3x6x16xf32>
    %387 = arith.addf %383, %386 : vector<3x6x16xf32>
    %388 = vector.extract_strided_slice %348 {offsets = [0, 10, 0], sizes = [3, 6, 16], strides = [1, 1, 1]} : vector<3x16x16xf32> to vector<3x6x16xf32>
    %cst_102 = arith.constant 0.00102838036 : f32
    %389 = vector.broadcast %cst_102 : f32 to vector<3x6x16xf32>
    %390 = arith.mulf %389, %388 : vector<3x6x16xf32>
    %391 = arith.addf %387, %390 : vector<3x6x16xf32>
    %392 = vector.extract_strided_slice %391 {offsets = [0, 0, 0], sizes = [3, 6, 6], strides = [1, 1, 1]} : vector<3x6x16xf32> to vector<3x6x6xf32>
    %cst_103 = arith.constant 0.00102838036 : f32
    %393 = vector.broadcast %cst_103 : f32 to vector<3x6x6xf32>
    %394 = arith.mulf %393, %392 : vector<3x6x6xf32>
    %395 = vector.extract_strided_slice %391 {offsets = [0, 0, 1], sizes = [3, 6, 6], strides = [1, 1, 1]} : vector<3x6x16xf32> to vector<3x6x6xf32>
    %cst_104 = arith.constant 0.00759875868 : f32
    %396 = vector.broadcast %cst_104 : f32 to vector<3x6x6xf32>
    %397 = arith.mulf %396, %395 : vector<3x6x6xf32>
    %398 = arith.addf %394, %397 : vector<3x6x6xf32>
    %399 = vector.extract_strided_slice %391 {offsets = [0, 0, 2], sizes = [3, 6, 6], strides = [1, 1, 1]} : vector<3x6x16xf32> to vector<3x6x6xf32>
    %cst_105 = arith.constant 0.0360007733 : f32
    %400 = vector.broadcast %cst_105 : f32 to vector<3x6x6xf32>
    %401 = arith.mulf %400, %399 : vector<3x6x6xf32>
    %402 = arith.addf %398, %401 : vector<3x6x6xf32>
    %403 = vector.extract_strided_slice %391 {offsets = [0, 0, 3], sizes = [3, 6, 6], strides = [1, 1, 1]} : vector<3x6x16xf32> to vector<3x6x6xf32>
    %cst_106 = arith.constant 0.109360702 : f32
    %404 = vector.broadcast %cst_106 : f32 to vector<3x6x6xf32>
    %405 = arith.mulf %404, %403 : vector<3x6x6xf32>
    %406 = arith.addf %402, %405 : vector<3x6x6xf32>
    %407 = vector.extract_strided_slice %391 {offsets = [0, 0, 4], sizes = [3, 6, 6], strides = [1, 1, 1]} : vector<3x6x16xf32> to vector<3x6x6xf32>
    %cst_107 = arith.constant 0.213005543 : f32
    %408 = vector.broadcast %cst_107 : f32 to vector<3x6x6xf32>
    %409 = arith.mulf %408, %407 : vector<3x6x6xf32>
    %410 = arith.addf %406, %409 : vector<3x6x6xf32>
    %411 = vector.extract_strided_slice %391 {offsets = [0, 0, 5], sizes = [3, 6, 6], strides = [1, 1, 1]} : vector<3x6x16xf32> to vector<3x6x6xf32>
    %cst_108 = arith.constant 0.266011745 : f32
    %412 = vector.broadcast %cst_108 : f32 to vector<3x6x6xf32>
    %413 = arith.mulf %412, %411 : vector<3x6x6xf32>
    %414 = arith.addf %410, %413 : vector<3x6x6xf32>
    %415 = vector.extract_strided_slice %391 {offsets = [0, 0, 6], sizes = [3, 6, 6], strides = [1, 1, 1]} : vector<3x6x16xf32> to vector<3x6x6xf32>
    %cst_109 = arith.constant 0.213005543 : f32
    %416 = vector.broadcast %cst_109 : f32 to vector<3x6x6xf32>
    %417 = arith.mulf %416, %415 : vector<3x6x6xf32>
    %418 = arith.addf %414, %417 : vector<3x6x6xf32>
    %419 = vector.extract_strided_slice %391 {offsets = [0, 0, 7], sizes = [3, 6, 6], strides = [1, 1, 1]} : vector<3x6x16xf32> to vector<3x6x6xf32>
    %cst_110 = arith.constant 0.109360702 : f32
    %420 = vector.broadcast %cst_110 : f32 to vector<3x6x6xf32>
    %421 = arith.mulf %420, %419 : vector<3x6x6xf32>
    %422 = arith.addf %418, %421 : vector<3x6x6xf32>
    %423 = vector.extract_strided_slice %391 {offsets = [0, 0, 8], sizes = [3, 6, 6], strides = [1, 1, 1]} : vector<3x6x16xf32> to vector<3x6x6xf32>
    %cst_111 = arith.constant 0.0360007733 : f32
    %424 = vector.broadcast %cst_111 : f32 to vector<3x6x6xf32>
    %425 = arith.mulf %424, %423 : vector<3x6x6xf32>
    %426 = arith.addf %422, %425 : vector<3x6x6xf32>
    %427 = vector.extract_strided_slice %391 {offsets = [0, 0, 9], sizes = [3, 6, 6], strides = [1, 1, 1]} : vector<3x6x16xf32> to vector<3x6x6xf32>
    %cst_112 = arith.constant 0.00759875868 : f32
    %428 = vector.broadcast %cst_112 : f32 to vector<3x6x6xf32>
    %429 = arith.mulf %428, %427 : vector<3x6x6xf32>
    %430 = arith.addf %426, %429 : vector<3x6x6xf32>
    %431 = vector.extract_strided_slice %391 {offsets = [0, 0, 10], sizes = [3, 6, 6], strides = [1, 1, 1]} : vector<3x6x16xf32> to vector<3x6x6xf32>
    %cst_113 = arith.constant 0.00102838036 : f32
    %432 = vector.broadcast %cst_113 : f32 to vector<3x6x6xf32>
    %433 = arith.mulf %432, %431 : vector<3x6x6xf32>
    %434 = arith.addf %430, %433 : vector<3x6x6xf32>
    %435 = arith.mulf %87, %87 : vector<3x6x6xf32>
    %436 = arith.mulf %173, %173 : vector<3x6x6xf32>
    %437 = arith.mulf %87, %173 : vector<3x6x6xf32>
    %438 = arith.subf %260, %435 : vector<3x6x6xf32>
    %439 = arith.subf %347, %436 : vector<3x6x6xf32>
    %440 = arith.subf %434, %437 : vector<3x6x6xf32>
    %cst_114 = arith.constant 2.000000e+00 : f32
    %441 = vector.broadcast %cst_114 : f32 to vector<3x6x6xf32>
    %442 = arith.mulf %441, %437 : vector<3x6x6xf32>
    %cst_115 = arith.constant 6.502500e+00 : f32
    %443 = vector.broadcast %cst_115 : f32 to vector<3x6x6xf32>
    %444 = arith.addf %442, %443 : vector<3x6x6xf32>
    %cst_116 = arith.constant 2.000000e+00 : f32
    %445 = vector.broadcast %cst_116 : f32 to vector<3x6x6xf32>
    %446 = arith.mulf %445, %440 : vector<3x6x6xf32>
    %cst_117 = arith.constant 5.852250e+01 : f32
    %447 = vector.broadcast %cst_117 : f32 to vector<3x6x6xf32>
    %448 = arith.addf %446, %447 : vector<3x6x6xf32>
    %449 = arith.mulf %444, %448 : vector<3x6x6xf32>
    %450 = arith.addf %435, %436 : vector<3x6x6xf32>
    %cst_118 = arith.constant 6.502500e+00 : f32
    %451 = vector.broadcast %cst_118 : f32 to vector<3x6x6xf32>
    %452 = arith.addf %450, %451 : vector<3x6x6xf32>
    %453 = arith.addf %438, %439 : vector<3x6x6xf32>
    %cst_119 = arith.constant 5.852250e+01 : f32
    %454 = vector.broadcast %cst_119 : f32 to vector<3x6x6xf32>
    %455 = arith.addf %453, %454 : vector<3x6x6xf32>
    %456 = arith.mulf %452, %455 : vector<3x6x6xf32>
    %457 = arith.divf %449, %456 : vector<3x6x6xf32>
    %458 = vector.shape_cast %457 : vector<3x6x6xf32> to vector<1x3x6x6xf32>
    %cst_120 = arith.constant dense<0.000000e+00> : vector<1xf32>
    %459 = vector.multi_reduction <add>, %458, %cst_120 [1, 2, 3] : vector<1x3x6x6xf32> to vector<1xf32>
    %460 = vector.shape_cast %459 : vector<1xf32> to vector<1x1x1x1xf32>
    %461 = vector.extract %460[0, 0, 0, 0] : f32 from vector<1x1x1x1xf32>
    %462 = vector.broadcast %461 : f32 to vector<1x1x1xf32>
    %c0_121 = arith.constant 0 : index
    %c0_122 = arith.constant 0 : index
    %c0_123 = arith.constant 0 : index
    %463 = vector.load %arg3[%c0_121, %c0_122, %c0_123] : memref<1x1x1xf32, #tpu.memory_space<vmem>>, vector<1x1x1xf32>
    tpu.vector_store %arg3[%c0_121, %c0_122, %c0_123], %462 {strides = array<i32>} : memref<1x1x1xf32, #tpu.memory_space<vmem>>, vector<1x1x1xf32>,
    return
  }
  func.func @transform_0(%arg0: i32) -> (i32, i32, i32) {
    %c0_i32 = arith.constant 0 : i32
    %c0_i32_0 = arith.constant 0 : i32
    %c0_i32_1 = arith.constant 0 : i32
    return %arg0, %c0_i32, %c0_i32_0 : i32, i32, i32
  }
  func.func @transform_1(%arg0: i32) -> (i32, i32, i32) {
    %c0_i32 = arith.constant 0 : i32
    %c0_i32_0 = arith.constant 0 : i32
    %c0_i32_1 = arith.constant 0 : i32
    return %arg0, %c0_i32, %c0_i32_0 : i32, i32, i32
  }
  func.func @transform_2(%arg0: i32) -> (i32, i32, i32) {
    %c0_i32 = arith.constant 0 : i32
    %c0_i32_0 = arith.constant 0 : i32
    %c0_i32_1 = arith.constant 0 : i32
    return %arg0, %c0_i32, %c0_i32_0 : i32, i32, i32
  }
}

</mosaic_0001>

<bundles_post_ra>
// kernel: tpu_custom_call.1
= control target key start
LH: loop header
LB: loop body
LE: loop exit
PB: predicated region body
PF: predicated region fallthrough
CT: control target
= control target key end

     0   :  { %7 = vsyncpa [#allocation3], 0  ;;  %s3446_s0 = inlined_call_operand.hbm [shape: f32[6,16,16], index: 0, kind: input, shape index: {}]   ;;  %s3447_s1 = inlined_call_operand.hbm [shape: f32[6,16,16], index: 1, kind: input, shape index: {}]   ;;  %s3448_s2 = inlined_call_operand.vmem [shape: f32[2,1,1], index: 2, kind: output, shape index: {}]  }
   0x1   :  { %9 = vsyncpa [#allocation3 + $0x1], 0 }
   0x2   :  { %10 = vsyncpa [#allocation5], 0 }
   0x3   :  { %12 = vsyncpa [#allocation5 + $0x1], 0  ;;  %s2293_s9 = smov 0   ;;  %s2295_s10 = smov 0  }
   0x4   :  { %s2297_s11 = smov 0   ;;  %s2299_s12 = smov 0  }
   0x5 LB: > { %s2312_s13 = sadd.s32 4294967295, %s2262_s12   ;;  %s2315_s14 = sadd.s32 1, %s2262_s12   ;;  %s2262_s12 = sphi %s2299_s12, %s3543_s12   ;;  %s2258_s11 = sphi %s2297_s11, %s3542_s11   ;;  %s2254_s10 = sphi %s2295_s10, %s3541_s10   ;;  %s2250_s9 = sphi %s2293_s9, %s3540_s9  }
   0x6   : > { %s22_s15 = ssub.s32 %s2262_s12, %s2315_s14  ;;  %s25_s16 = sadd.s32 1, %s2258_s11 }
   0x7   : > { %p23_p0 = scmp.eq.s32.totalorder %s22_s15, 0  ;;  %p32_p1 = scmp.ne.s32.totalorder %s2258_s11, %s2254_s10 }
   0x8   : > { %p33_p2 = scmp.eq.s32.totalorder %s2262_s12, 0  ;;  %p38_p3 = scmp.ne.s32.totalorder %s2254_s10, %s2250_s9 }
   0x9   : > { %s2325_s17 = scalar_select %p23_p0, %s2258_s11, %s25_s16  }
   0xa   : > { %p34_p4 = por %p33_p2, %p32_p1  ;;  %p39_p5 = scmp.eq.s32.totalorder %s2312_s13, 0 }
   0xb   : > { %p2105_p6 = scmp.lt.s32.totalorder %s2262_s12, 2  ;;  %s2334_s19 = sand.u32 1, %s2258_s11  }
   0xc   : > { %p2329_p7 = por %p39_p5, %p38_p3  ;;  %s2089_s20 = smul.u32 48, %s2334_s19 }
   0xd   : > { %s2087_s21 = smul.u32 768, %s2262_s12  ;;  %p2338_p8 = pnand %p2105_p6, %p34_p4 }
   0xe   : > { %s3457_s18 = scalar_select %p2329_p7, 1, 0 }
   0xf   : > { %s2347_s25 = scalar_lea.hbm %s3446_s0, %s2087_s21  ;;  %s118_s26 = scalar_lea.vmem [#allocation2], %s2089_s20 }
  0x10   : > { %s126_s27 = sshll.u32 %s118_s26, 4  ;;  %s115_s28 = scalar_lea.sflag [#allocation3], %s2334_s19  ;;  %s2351_s27 = int_to_ptr.vmem [resolvable:$true] %s126_s27 }
  0x11   : > { %s2168_s29 = scalar_lea.hbm %s2347_s25, 768  ;;  %p2170_p11 = pneg %p2338_p8 }
  0x12   : > { %p2169_p10 = scmp.ne.s32.totalorder %s2347_s25, %s2168_s29  ;;  %s2173_s4 = scalar_lea.hbm %s3446_s0, 1536 }
  0x13   : > { %p2174_p0 = scmp.lt.s32.totalorder %s2347_s25, %s3446_s0  ;;  %p2175_p1 = scmp.lt.s32.totalorder %s2173_s4, %s2168_s29 }
  0x14   : > { %p2171_p12 = pnand %p2170_p11, %p2169_p10 }
  0x15   : > { %p2176_p2 = por %p2175_p1, %p2174_p0 }
  0x16   : > { %p2172_p13 = pneg %p2171_p12 }
  0x18   : > { %p2177_p3 = pnand %p2176_p2, %p2172_p13 }
  0x1a   : > { %2180 = shalt.err (!%p2177_p3)
}
  0x1b   : > { %s2181_s7 = scalar_lea.vmem %s2351_s27, 768  ;;  %s2264_s8 = smov [#allocation2]  }
  0x1c   : > { %p2182_p4 = scmp.ne.s32.totalorder %s2351_s27, %s2181_s7  ;;  %s2186_s9 = sshll.u32 %s2264_s8, 4  ;;  %s2187_s9 = int_to_ptr.vmem [resolvable:$false] %s2186_s9 }
  0x1d   : > { %s2188_s15 = scalar_lea.vmem %s2187_s9, 1536  ;;  %p2189_p10 = scmp.lt.s32.totalorder %s2351_s27, %s2187_s9 }
  0x1e   : > { %p2184_p5 = pnand %p2182_p4, %p2170_p11  ;;  %p2190_p12 = scmp.lt.s32.totalorder %s2188_s15, %s2181_s7 }
  0x20   : > { %p2185_p6 = pneg %p2184_p5  ;;  %p2191_p9 = por %p2190_p12, %p2189_p10 }
  0x22   : > { %p2192_p0 = pnand %p2191_p9, %p2185_p6 }
  0x24   : > { %2195 = shalt.err (!%p2192_p0)
}
  0x25   : > { %s2265_s16 = smov 128   ;;  %s2266_s23 = smov 8  }
  0x26   : > { %2101 = dma.hbm_to_vmem [thread:$0]  (!%p2338_p8), %s2347_s25, 768, %s2351_s27, %s115_s28, %s2265_s16, %s2265_s16, %s2266_s23  }
  0x27   : > { %p156_p9 = scmp.lt.s32.totalorder %s2262_s12, 3  ;;  %s2390_s29 = scalar_lea.hbm %s3447_s1, %s2087_s21 }
  0x28   : > { %p3459_p13 = scmp.ge.s32.totalorder %s2262_s12, 1  ;;  %s140_s3 = scalar_lea.vmem [#allocation4], %s2089_s20 }
  0x29   : > { %s148_s4 = sshll.u32 %s140_s3, 4  ;;  %s137_s25 = scalar_lea.sflag [#allocation5], %s2334_s19  ;;  %s2400_s4 = int_to_ptr.vmem [resolvable:$true] %s148_s4 }
  0x2a   : > { %p2394_p1 = pnand %p3459_p13, %p156_p9  ;;  %s2196_s27 = scalar_lea.hbm %s2390_s29, 768 }
  0x2b   : > { %p2197_p2 = scmp.ne.s32.totalorder %s2390_s29, %s2196_s27  ;;  %s2201_s28 = scalar_lea.hbm %s3447_s1, 1536 }
  0x2c   : > { %p2202_p5 = scmp.lt.s32.totalorder %s2390_s29, %s3447_s1  ;;  %p2203_p6 = scmp.lt.s32.totalorder %s2201_s28, %s2196_s27 }
  0x2d   : > { %p2199_p3 = pnand %p2197_p2, %p2170_p11 }
  0x2e   : > { %p2204_p10 = por %p2203_p6, %p2202_p5 }
  0x2f   : > { %p2200_p4 = pneg %p2199_p3 }
  0x31   : > { %p2205_p12 = pnand %p2204_p10, %p2200_p4 }
  0x33   : > { %2208 = shalt.err (!%p2205_p12)
}
  0x34   : > { %s2209_s19 = scalar_lea.vmem %s2400_s4, 768  ;;  %s2267_s20 = smov [#allocation4]  }
  0x35   : > { %p2210_p0 = scmp.ne.s32.totalorder %s2400_s4, %s2209_s19  ;;  %s2214_s7 = sshll.u32 %s2267_s20, 4  ;;  %s2215_s7 = int_to_ptr.vmem [resolvable:$false] %s2214_s7 }
  0x36   : > { %s2216_s8 = scalar_lea.vmem %s2215_s7, 1536  ;;  %p2217_p2 = scmp.lt.s32.totalorder %s2400_s4, %s2215_s7 }
  0x37   : > { %p2212_p9 = pnand %p2210_p0, %p2170_p11  ;;  %p2218_p3 = scmp.lt.s32.totalorder %s2216_s8, %s2209_s19 }
  0x39   : > { %p2213_p13 = pneg %p2212_p9  ;;  %p2219_p7 = por %p2218_p3, %p2217_p2 }
  0x3b   : > { %p2220_p5 = pnand %p2219_p7, %p2213_p13 }
  0x3d   : > { %2223 = shalt.err (!%p2220_p5)
}
  0x3e   : > { %2104 = dma.hbm_to_vmem [thread:$0]  (!%p2338_p8), %s2390_s29, 768, %s2400_s4, %s137_s25, %s2265_s16, %s2265_s16, %s2266_s23  }
  0x3f   : > { %160 = sbr.rel (%p2394_p1) target bundleno = 764 (0x2fc), region = 28 }
  0x44   : > { %s162_s9 = sand.u32 1, %s2254_s10   ;;  %p3461_p7 = scmp.ne.s32.totalorder %s3457_s18, 0 }
  0x45   : > { %s2091_s15 = smul.u32 48, %s162_s9  ;;  %s163_s24 = scalar_lea.sflag [#allocation3], %s162_s9 }
  0x47   : > { %s2431_s26 = scalar_lea.vmem [#allocation2], %s2091_s15 }
  0x48   : > { %2241 = dma.done.wait (%p3461_p7), %s163_s24, 768  }
  0x49   : > { %2243 = vsyncadd (%p3461_p7), %s163_s24, 4294966528  ;;  %s172_s22 = scalar_lea.sflag [#allocation5], %s162_s9  ;;  %s2437_s3 = scalar_lea.vmem [#allocation4], %s2091_s15 }
  0x4a   : > { %2245 = dma.done.wait (%p3461_p7), %s172_s22, 768  }
  0x4b   : > { %2247 = vsyncadd (%p3461_p7), %s172_s22, 4294966528  ;;  %vm261_vm0 = vcmask 1044480   ;;  %vm289_vm1 = vcmask 1043456   ;;  %v208_v0 = vld [vmem:[%s2431_s26 + $0x20] sm:$0xff]  ;;  %v2445_v1 = vld [vmem:[%s2431_s26 + $0x28] sm:$0xff]  ;;  %vm317_vm2 = vcmask 1042432  }
  0x4c   : > { %vm333_vm3 = vcmask 1041408   ;;  %vm349_vm4 = vcmask 1040384   ;;  %v204_v2 = vld [vmem:[%s2431_s26] sm:$0xff]  ;;  %v218_v3 = vmul.f32 0.0010283804, %v208_v0  ;;  %v2455_v29 = vmul.f32 %v208_v0, %v208_v0  ;;  %v2462_v34 = vld [vmem:[%s2431_s26 + $0x8] sm:$0xff] }
  0x4d   : > { %v221_v4 = vmul.f32 0.0075987587, %v208_v0  ;;  %v236_v5 = vmul.f32 0.036000773, %v208_v0  ;;  %v253_v6 = vmul.f32 0.1093607, %v208_v0  ;;  %v2449_v9 = vmul.f32 %v204_v2, %v204_v2 }
  0x4e   : > { %v254_v7 = vmul.f32 0.1093607, %v2445_v1  ;;  %v281_v8 = vmul.f32 0.21300554, %v208_v0  ;;  %v282_v12 = vmul.f32 0.21300554, %v2445_v1 }
  0x4f   : > { %v227_v10 = vrot.slane %v221_v4, 1  ;;  %v242_v11 = vrot.slane %v236_v5, 2  ;;  %v309_v13 = vmul.f32 0.26601174, %v208_v0  ;;  %v268_v14 = vrot.slane %v253_v6, 3  ;;  %v2472_v4 = vld [vmem:[%s2431_s26 + $0x10] sm:$0xff] }
  0x50   : > { %v269_v15 = vrot.slane %v254_v7, 3  ;;  %v296_v16 = vrot.slane %v281_v8, 4  ;;  %v310_v17 = vmul.f32 0.26601174, %v2445_v1  ;;  %v297_v19 = vrot.slane %v282_v12, 4  ;;  %s2268_s18 = smov 127  }
  0x51   : > { %v233_v18 = vadd.f32 %v227_v10, %v218_v3  ;;  %v324_v20 = vrot.slane %v309_v13, 5  ;;  %v340_v21 = vrot.slane %v281_v8, 6  ;;  %v341_v24 = vrot.slane %v282_v12, 6  ;;  %v2476_v10 = vld [vmem:[%s2431_s26 + $0x18] sm:$0xff]  ;;  %s2269_s16 = smov 126   ;;  %s2270_s23 = smov 125  }
  0x52   : > { %v270_v22 = vsel %vm261_vm0, %v268_v14, %v269_v15  ;;  %v325_v23 = vrot.slane %v310_v17, 5  ;;  %v356_v25 = vrot.slane %v253_v6, 7  ;;  %v298_v27 = vsel %vm289_vm1, %v296_v16, %v297_v19  ;;  %s2271_s29 = smov 124   ;;  %s2272_s30 = smov 123  }
  0x53   : > { %v248_v26 = vadd.f32 %v242_v11, %v233_v18  ;;  %v357_v28 = vrot.slane %v254_v7, 7  ;;  %v342_v31 = vsel %vm333_vm3, %v340_v21, %v341_v24  ;;  %v367_v32 = vmul.f32 0.036000773, %v2445_v1  ;;  %s2273_s4 = smov 122   ;;  %s2274_s25 = smov 121  }
  0x54   : > { %v326_v30 = vsel %vm317_vm2, %v324_v20, %v325_v23  ;;  %v373_v33 = vmul.f32 0.0075987587, %v2445_v1  ;;  %v388_v36 = vmul.f32 0.0010283804, %v2445_v1  ;;  %v216_v37 = vmul.f32 0.0010283804, %v204_v2 }
  0x55   : > { %v276_v35 = vadd.f32 %v270_v22, %v248_v26  ;;  %v219_v38 = vmul.f32 0.0075987587, %v204_v2  ;;  %v358_v39 = vsel %vm349_vm4, %v356_v25, %v357_v28  ;;  %v234_v41 = vmul.f32 0.036000773, %v204_v2  ;;  %s2275_s27 = smov 120   ;;  %s2276_s12 = smov 119  }
  0x56   : > { %v379_v40 = vrot.slane %v373_v33, 1  ;;  %v249_v42 = vmul.f32 0.1093607, %v204_v2  ;;  %v250_v45 = vmul.f32 0.1093607, %v2462_v34  ;;  %v394_v6 = vrot.slane %v388_v36, 2 }
  0x57   : > { %v304_v43 = vadd.f32 %v298_v27, %v276_v35  ;;  %v225_v44 = vrot.slane %v219_v38, 1  ;;  %v277_v46 = vmul.f32 0.21300554, %v204_v2  ;;  %v240_v47 = vrot.slane %v234_v41, 2  ;;  %s2277_s21 = smov 118   ;;  %p201_p8 = scmp.lt.s32.totalorder %s2312_s13, 1 }
  0x58   : > { %v262_v48 = vrot.slane %v249_v42, 3  ;;  %v278_v49 = vmul.f32 0.21300554, %v2462_v34  ;;  %v305_v50 = vmul.f32 0.26601174, %v204_v2  ;;  %v263_v53 = vrot.slane %v250_v45, 3 }
  0x59   : > { %v332_v51 = vadd.f32 %v326_v30, %v304_v43  ;;  %v231_v52 = vadd.f32 %v225_v44, %v216_v37  ;;  %v290_v54 = vrot.slane %v277_v46, 4  ;;  %v306_v56 = vmul.f32 0.26601174, %v2462_v34  ;;  %s3545_s13 = smov (!%p201_p8, %s2312_s13), 1 }
  0x5a   : > { %v291_v55 = vrot.slane %v278_v49, 4  ;;  %v318_v57 = vrot.slane %v305_v50, 5  ;;  %v334_v58 = vrot.slane %v277_v46, 6  ;;  %v264_v61 = vsel %vm261_vm0, %v262_v48, %v263_v53  ;;  %s203_s6 = scalar_lea.vmem %s3448_s2, %s3545_s13 }
  0x5b   : > { %v348_v59 = vadd.f32 %v342_v31, %v332_v51  ;;  %v246_v60 = vadd.f32 %v240_v47, %v231_v52  ;;  %v335_v62 = vrot.slane %v278_v49, 6  ;;  %v319_v0 = vrot.slane %v306_v56, 5 }
  0x5c   : > { %v292_v63 = vsel %vm289_vm1, %v290_v54, %v291_v55  ;;  %v350_v2 = vrot.slane %v249_v42, 7  ;;  %v351_v3 = vrot.slane %v250_v45, 7  ;;  %v365_v12 = vmul.f32 0.036000773, %v2462_v34 }
  0x5d   : > { %v364_v5 = vadd.f32 %v358_v39, %v348_v59  ;;  %v274_v7 = vadd.f32 %v264_v61, %v246_v60  ;;  %v336_v8 = vsel %vm333_vm3, %v334_v58, %v335_v62  ;;  %v320_v11 = vsel %vm317_vm2, %v318_v57, %v319_v0 }
  0x5e   : > { %v371_v13 = vmul.f32 0.0075987587, %v2462_v34  ;;  %v386_v14 = vmul.f32 0.0010283804, %v2462_v34  ;;  %v217_v17 = vmul.f32 0.0010283804, %v2472_v4  ;;  %v352_v19 = vsel %vm349_vm4, %v350_v2, %v351_v3 }
  0x5f   : > { %v370_v15 = vadd.f32 %v367_v32, %v364_v5  ;;  %v302_v16 = vadd.f32 %v292_v63, %v274_v7  ;;  %v220_v18 = vmul.f32 0.0075987587, %v2472_v4  ;;  %v235_v21 = vmul.f32 0.036000773, %v2472_v4  ;;  %v2510_v7 = vld [vmem:[%s2437_s3] sm:$0xff] }
  0x60   : > { %v377_v20 = vrot.slane %v371_v13, 1  ;;  %v251_v22 = vmul.f32 0.1093607, %v2472_v4  ;;  %v252_v26 = vmul.f32 0.1093607, %v2476_v10  ;;  %v392_v50 = vrot.slane %v386_v14, 2 }
  0x61   : > { %v385_v23 = vadd.f32 %v379_v40, %v370_v15  ;;  %v330_v24 = vadd.f32 %v320_v11, %v302_v16  ;;  %v226_v25 = vrot.slane %v220_v18, 1  ;;  %v241_v27 = vrot.slane %v235_v21, 2 }
  0x62   : > { %v265_v28 = vrot.slane %v251_v22, 3  ;;  %v279_v30 = vmul.f32 0.21300554, %v2472_v4  ;;  %v280_v31 = vmul.f32 0.21300554, %v2476_v10  ;;  %v266_v36 = vrot.slane %v252_v26, 3 }
  0x63   : > { %v400_v32 = vadd.f32 %v394_v6, %v385_v23  ;;  %v346_v33 = vadd.f32 %v336_v8, %v330_v24  ;;  %v232_v35 = vadd.f32 %v226_v25, %v217_v17  ;;  %v307_v39 = vmul.f32 0.26601174, %v2472_v4  ;;  %v2513_v8 = vld [vmem:[%s2437_s3 + $0x8] sm:$0xff] }
  0x64   : > { %v293_v37 = vrot.slane %v279_v30, 4  ;;  %v294_v38 = vrot.slane %v280_v31, 4  ;;  %v308_v40 = vmul.f32 0.26601174, %v2476_v10  ;;  %v267_v44 = vsel %vm261_vm0, %v265_v28, %v266_v36 }
  0x65   : > { %v2492_v41 = vmul.f32 0.0075987587, %v400_v32  ;;  %v362_v42 = vadd.f32 %v352_v19, %v346_v33  ;;  %v247_v43 = vadd.f32 %v241_v27, %v232_v35  ;;  %v321_v46 = vrot.slane %v307_v39, 5 }
  0x66   : > { %v295_v45 = vsel %vm289_vm1, %v293_v37, %v294_v38  ;;  %v322_v47 = vrot.slane %v308_v40, 5  ;;  %v337_v48 = vrot.slane %v279_v30, 6  ;;  %v338_v52 = vrot.slane %v280_v31, 6 }
  0x67   : > { %414 = vrot.lane.b32.xlu1 %v2492_v41, %s2268_s18  ;;  %v368_v49 = vadd.f32 %v365_v12, %v362_v42  ;;  %v275_v51 = vadd.f32 %v267_v44, %v247_v43  ;;  %v353_v54 = vrot.slane %v251_v22, 7  ;;  %v354_v55 = vrot.slane %v252_v26, 7 }
  0x68   : > { %v323_v53 = vsel %vm317_vm2, %v321_v46, %v322_v47  ;;  %v372_v56 = vmul.f32 0.0075987587, %v2476_v10  ;;  %v366_v59 = vmul.f32 0.036000773, %v2476_v10  ;;  %v387_v60 = vmul.f32 0.0010283804, %v2476_v10 }
  0x69   : > { %v383_v57 = vadd.f32 %v377_v20, %v368_v49  ;;  %v303_v58 = vadd.f32 %v295_v45, %v275_v51  ;;  %v339_v61 = vsel %vm333_vm3, %v337_v48, %v338_v52  ;;  %v2503_v63 = vmul.f32 0.036000773, %v400_v32 }
  0x6a   : > { %v378_v62 = vrot.slane %v372_v56, 1  ;;  %v2505_v0 = vmul.f32 0.1093607, %v400_v32  ;;  %v393_v5 = vrot.slane %v387_v60, 2  ;;  %v2507_v6 = vmul.f32 0.21300554, %v400_v32 }
  0x6b   : > { %v398_v2 = vadd.f32 %v392_v50, %v383_v57  ;;  %v331_v3 = vadd.f32 %v323_v53, %v303_v58  ;;  %v355_v11 = vsel %vm349_vm4, %v353_v54, %v354_v55  ;;  %v2516_v12 = vmul.f32 0.26601174, %v400_v32  ;;  %v2564_v56 = vld [vmem:[%s2437_s3 + $0x10] sm:$0xff]  ;;  %v2567_v57 = vld [vmem:[%s2437_s3 + $0x18] sm:$0xff] }
  0x6c   : > { %v2518_v13 = vmul.f32 0.0010283804, %v400_v32  ;;  %v557_v14 = vmul.f32 0.0010283804, %v2510_v7  ;;  %v2535_v22 = vmul.f32 %v2462_v34, %v2462_v34  ;;  %v560_v24 = vmul.f32 0.0075987587, %v2510_v7 }
  0x6d   : > { %v2521_v15 = vmul.f32 0.0075987587, %v398_v2  ;;  %v2523_v16 = vmul.f32 0.036000773, %v398_v2  ;;  %v347_v17 = vadd.f32 %v339_v61, %v331_v3  ;;  %v2525_v18 = vmul.f32 0.1093607, %v398_v2 }
  0x6e   : > { %3462 = vst [vmem:[#allocation8_spill] sm:$0xff] %v2518_v13  ;;  %v2527_v19 = vmul.f32 0.21300554, %v398_v2  ;;  %v2529_v20 = vmul.f32 0.26601174, %v398_v2  ;;  %v2549_v30 = vmul.f32 %v2472_v4, %v2472_v4  ;;  %v566_v32 = vrot.slane %v560_v24, 1 }
  0x6f   : > { %v2531_v21 = vmul.f32 0.0010283804, %v398_v2  ;;  %410 = vrot.lane.b32.xlu0 %v2521_v15, %s2268_s18  ;;  %428 = vrot.lane.b32.xlu1 %v2523_v16, %s2269_s16  ;;  %v363_v23 = vadd.f32 %v355_v11, %v347_v17  ;;  %v575_v25 = vmul.f32 0.036000773, %v2510_v7  ;;  %v590_v26 = vmul.f32 0.1093607, %v2510_v7 }
  0x70   : > { %v591_v27 = vmul.f32 0.1093607, %v2513_v8  ;;  %v617_v28 = vmul.f32 0.21300554, %v2510_v7  ;;  %v618_v34 = vmul.f32 0.21300554, %v2513_v8  ;;  %v572_v42 = vadd.f32 %v566_v32, %v557_v14 }
  0x71   : > { %3463 = vst [vmem:[#allocation9_spill] sm:$0xff] %v2531_v21  ;;  %v369_v31 = vadd.f32 %v366_v59, %v363_v23  ;;  %v581_v33 = vrot.slane %v575_v25, 2  ;;  %v602_v35 = vrot.slane %v590_v26, 3  ;;  %v644_v39 = vmul.f32 0.26601174, %v2510_v7 }
  0x72   : > { %v603_v36 = vrot.slane %v591_v27, 3  ;;  %v629_v37 = vrot.slane %v617_v28, 4  ;;  %v630_v38 = vrot.slane %v618_v34, 4  ;;  %v645_v43 = vmul.f32 0.26601174, %v2513_v8 }
  0x73   : > { %v384_v40 = vadd.f32 %v378_v62, %v369_v31  ;;  %432 = vrot.lane.b32.xlu1 %v2503_v63, %s2269_s16  ;;  %v671_v4 = vrot.slane %v617_v28, 6  ;;  %v656_v45 = vrot.slane %v644_v39, 5  ;;  %v672_v46 = vrot.slane %v618_v34, 6 }
  0x74   : > { %v604_v44 = vsel %vm261_vm0, %v602_v35, %v603_v36  ;;  %v2558_v47 = vmul.f32 %v2476_v10, %v2476_v10  ;;  %v587_v49 = vadd.f32 %v581_v33, %v572_v42  ;;  %v631_v50 = vsel %vm289_vm1, %v629_v37, %v630_v38 }
  0x75   : > { %v399_v48 = vadd.f32 %v393_v5, %v384_v40  ;;  %v657_v51 = vrot.slane %v645_v43, 5  ;;  %v673_v52 = vsel %vm333_vm3, %v671_v4, %v672_v46  ;;  %v686_v53 = vrot.slane %v590_v26, 7 }
  0x76   : > { %v687_v54 = vrot.slane %v591_v27, 7  ;;  %v707_v55 = vmul.f32 0.0075987587, %v2513_v8  ;;  %v614_v10 = vadd.f32 %v604_v44, %v587_v49  ;;  %v701_v60 = vmul.f32 0.036000773, %v2513_v8 }
  0x77   : > { %v2569_v58 = vmul.f32 0.0075987587, %v399_v48  ;;  %v2571_v59 = vmul.f32 0.1093607, %v399_v48  ;;  %v2574_v61 = vmul.f32 0.036000773, %v399_v48  ;;  %v658_v3 = vsel %vm317_vm2, %v656_v45, %v657_v51 }
  0x78   : > { %v2576_v62 = vmul.f32 0.21300554, %v399_v48  ;;  %v477_v2 = vmul.f32 0.26601174, %v399_v48  ;;  %v2583_v5 = vmul.f32 0.0010283804, %v399_v48  ;;  %v641_v11 = vadd.f32 %v631_v50, %v614_v10 }
  0x79   : > { %412 = vrot.lane.b32.xlu0 %v2569_v58, %s2268_s18  ;;  %448 = vrot.lane.b32.xlu1 %v2571_v59, %s2270_s23  ;;  %v713_v14 = vrot.slane %v707_v55, 1  ;;  %v722_v17 = vmul.f32 0.0010283804, %v2513_v8  ;;  %v688_v23 = vsel %vm349_vm4, %v686_v53, %v687_v54  ;;  %v558_v24 = vmul.f32 0.0010283804, %v2564_v56 }
  0x7a   : > { %3464 = vst [vmem:[#allocation10_spill] sm:$0xff] %v2583_v5  ;;  %v561_v25 = vmul.f32 0.0075987587, %v2564_v56  ;;  %v576_v26 = vmul.f32 0.036000773, %v2564_v56  ;;  %v668_v27 = vadd.f32 %v658_v3, %v641_v11  ;;  %v2594_v31 = vmul.f32 %v2510_v7, %v2510_v7  ;;  %v2611_v3 = vld [vmem:[%s2437_s3 + $0x20] sm:$0xff] }
  0x7b   : > { %v592_v28 = vmul.f32 0.1093607, %v2564_v56  ;;  %v593_v34 = vmul.f32 0.1093607, %v2567_v57  ;;  %v619_v35 = vmul.f32 0.21300554, %v2564_v56 }
  0x7c   : > { %v567_v32 = vrot.slane %v561_v25, 1  ;;  %v582_v33 = vrot.slane %v576_v26, 2  ;;  %v620_v36 = vmul.f32 0.21300554, %v2567_v57  ;;  %v683_v37 = vadd.f32 %v673_v52, %v668_v27  ;;  %v2617_v25 = vld [vmem:[%s2437_s3 + $0x28] sm:$0xff] }
  0x7d   : > { %430 = vrot.lane.b32.xlu0 %v2574_v61, %s2269_s16  ;;  %464 = vrot.lane.b32.xlu1 %v2527_v19, %s2271_s29  ;;  %v605_v38 = vrot.slane %v592_v28, 3  ;;  %v606_v39 = vrot.slane %v593_v34, 3  ;;  %v646_v40 = vmul.f32 0.26601174, %v2564_v56  ;;  %v632_v42 = vrot.slane %v619_v35, 4 }
  0x7e   : > { %v573_v7 = vadd.f32 %v567_v32, %v558_v24  ;;  %v633_v43 = vrot.slane %v620_v36, 4  ;;  %v647_v4 = vmul.f32 0.26601174, %v2567_v57  ;;  %v698_v44 = vadd.f32 %v688_v23, %v683_v37 }
  0x7f   : > { %v607_v45 = vsel %vm261_vm0, %v605_v38, %v606_v39  ;;  %v659_v46 = vrot.slane %v646_v40, 5  ;;  %v674_v48 = vrot.slane %v619_v35, 6  ;;  %v728_v49 = vrot.slane %v722_v17, 2 }
  0x80   : > { %v588_v50 = vadd.f32 %v582_v33, %v573_v7  ;;  %v660_v51 = vrot.slane %v647_v4, 5  ;;  %v675_v52 = vrot.slane %v620_v36, 6  ;;  %v704_v53 = vadd.f32 %v701_v60, %v698_v44 }
  0x81   : > { %446 = vrot.lane.b32.xlu0 %v2525_v18, %s2270_s23  ;;  %468 = vrot.lane.b32.xlu1 %v2507_v6, %s2271_s29  ;;  %v634_v54 = vsel %vm289_vm1, %v632_v42, %v633_v43  ;;  %v689_v55 = vrot.slane %v592_v28, 7  ;;  %v690_v10 = vrot.slane %v593_v34, 7  ;;  %v702_v17 = vmul.f32 0.036000773, %v2567_v57 }
  0x82   : > { %v615_v11 = vadd.f32 %v607_v45, %v588_v50  ;;  %v661_v23 = vsel %vm317_vm2, %v659_v46, %v660_v51  ;;  %v708_v24 = vmul.f32 0.0075987587, %v2567_v57  ;;  %v719_v26 = vadd.f32 %v713_v14, %v704_v53 }
  0x83   : > { %v676_v27 = vsel %vm333_vm3, %v674_v48, %v675_v52  ;;  %v691_v60 = vsel %vm349_vm4, %v689_v55, %v690_v10  ;;  %v723_v32 = vmul.f32 0.0010283804, %v2567_v57  ;;  %v559_v34 = vmul.f32 0.0010283804, %v2611_v3 }
  0x84   : > { %v642_v28 = vadd.f32 %v634_v54, %v615_v11  ;;  %v562_v33 = vmul.f32 0.0075987587, %v2611_v3  ;;  %v577_v35 = vmul.f32 0.036000773, %v2611_v3  ;;  %v2628_v14 = vadd.f32 %v728_v49, %v719_v26 }
  0x85   : > { %450 = vrot.lane.b32.xlu0 %v2505_v0, %s2270_s23  ;;  %484 = vrot.lane.b32.xlu1 %v477_v2, %s2272_s30  ;;  %v714_v36 = vrot.slane %v708_v24, 1  ;;  %v594_v37 = vmul.f32 0.1093607, %v2611_v3  ;;  %v595_v38 = vmul.f32 0.1093607, %v2617_v25  ;;  %v729_v43 = vrot.slane %v723_v32, 2 }
  0x86   : > { %v669_v39 = vadd.f32 %v661_v23, %v642_v28  ;;  %v568_v40 = vrot.slane %v562_v33, 1  ;;  %v583_v7 = vrot.slane %v577_v35, 2  ;;  %v621_v42 = vmul.f32 0.21300554, %v2611_v3 }
  0x87   : > { %v608_v4 = vrot.slane %v594_v37, 3  ;;  %v609_v44 = vrot.slane %v595_v38, 3  ;;  %v622_v45 = vmul.f32 0.21300554, %v2617_v25  ;;  %v648_v49 = vmul.f32 0.26601174, %v2611_v3 }
  0x88   : > { %v684_v46 = vadd.f32 %v676_v27, %v669_v39  ;;  %v574_v48 = vadd.f32 %v568_v40, %v559_v34  ;;  %v635_v2 = vrot.slane %v621_v42, 4  ;;  %v649_v52 = vmul.f32 0.26601174, %v2617_v25 }
  0x89   : > { %466 = vrot.lane.b32.xlu0 %v2576_v62, %s2271_s29  ;;  %494 = vrot.lane.b32.xlu1 %v2527_v19, %s2273_s4  ;;  %v610_v50 = vsel %vm261_vm0, %v608_v4, %v609_v44  ;;  %v636_v51 = vrot.slane %v622_v45, 4  ;;  %v677_v53 = vrot.slane %v621_v42, 6  ;;  %v662_v10 = vrot.slane %v648_v49, 5 }
  0x8a   : > { %v699_v54 = vadd.f32 %v691_v60, %v684_v46  ;;  %v589_v55 = vadd.f32 %v583_v7, %v574_v48  ;;  %v678_v11 = vrot.slane %v622_v45, 6  ;;  %v663_v24 = vrot.slane %v649_v52, 5 }
  0x8b   : > { %v637_v23 = vsel %vm289_vm1, %v635_v2, %v636_v51  ;;  %v692_v26 = vrot.slane %v594_v37, 7  ;;  %v693_v27 = vrot.slane %v595_v38, 7  ;;  %v2643_v32 = vmul.f32 0.0075987587, %v2628_v14 }
  0x8c   : > { %v705_v28 = vadd.f32 %v702_v17, %v699_v54  ;;  %v616_v19 = vadd.f32 %v610_v50, %v589_v55  ;;  %v679_v34 = vsel %vm333_vm3, %v677_v53, %v678_v11  ;;  %v664_v60 = vsel %vm317_vm2, %v662_v10, %v663_v24 }
  0x8d   : > { %482 = vrot.lane.b32.xlu0 %v2529_v20, %s2272_s30  ;;  %498 = vrot.lane.b32.xlu1 %v2507_v6, %s2273_s4  ;;  %v703_v33 = vmul.f32 0.036000773, %v2617_v25  ;;  %v709_v35 = vmul.f32 0.0075987587, %v2617_v25  ;;  %v724_v37 = vmul.f32 0.0010283804, %v2617_v25  ;;  %v694_v20 = vsel %vm349_vm4, %v692_v26, %v693_v27 }
  0x8e   : > { %v720_v38 = vadd.f32 %v714_v36, %v705_v28  ;;  %v643_v39 = vadd.f32 %v637_v23, %v616_v19  ;;  %v2655_v17 = vmul.f32 0.036000773, %v2628_v14  ;;  %v2658_v40 = vmul.f32 0.1093607, %v2628_v14 }
  0x8f   : > { %v715_v7 = vrot.slane %v709_v35, 1  ;;  %v899_v6 = vmul.f32 0.0010283804, %v2449_v9  ;;  %v902_v42 = vmul.f32 0.0075987587, %v2449_v9  ;;  %v730_v46 = vrot.slane %v724_v37, 2 }
  0x90   : > { %v2663_v4 = vadd.f32 %v729_v43, %v720_v38  ;;  %v670_v44 = vadd.f32 %v664_v60, %v643_v39  ;;  %v917_v45 = vmul.f32 0.036000773, %v2449_v9  ;;  %v932_v36 = vmul.f32 0.1093607, %v2449_v9 }
  0x91   : > { %486 = vrot.lane.b32.xlu0 %v2516_v12, %s2272_s30  ;;  %508 = vrot.lane.b32.xlu1 %v2571_v59, %s2274_s25  ;;  %v908_v48 = vrot.slane %v902_v42, 1  ;;  %v933_v2 = vmul.f32 0.1093607, %v2535_v22  ;;  %v959_v49 = vmul.f32 0.21300554, %v2449_v9  ;;  %v2681_v12 = vmul.f32 %v2513_v8, %v2513_v8 }
  0x92   : > { %v2674_v43 = vmul.f32 0.0075987587, %v2663_v4  ;;  %v685_v50 = vadd.f32 %v679_v34, %v670_v44  ;;  %v2677_v51 = vmul.f32 0.036000773, %v2663_v4  ;;  %v923_v53 = vrot.slane %v917_v45, 2 }
  0x93   : > { %v914_v52 = vadd.f32 %v908_v48, %v899_v6  ;;  %v944_v59 = vrot.slane %v932_v36, 3  ;;  %v945_v54 = vrot.slane %v933_v2, 3  ;;  %v960_v10 = vmul.f32 0.21300554, %v2535_v22 }
  0x94   : > { %v700_v55 = vadd.f32 %v694_v20, %v685_v50  ;;  %v971_v11 = vrot.slane %v959_v49, 4  ;;  %v986_v23 = vmul.f32 0.26601174, %v2449_v9  ;;  %v987_v26 = vmul.f32 0.26601174, %v2535_v22 }
  0x95   : > { %496 = vrot.lane.b32.xlu0 %v2576_v62, %s2273_s4  ;;  %518 = vrot.lane.b32.xlu1 %v2523_v16, %s2275_s27  ;;  %v929_v24 = vadd.f32 %v923_v53, %v914_v52  ;;  %v946_v8 = vsel %vm261_vm0, %v944_v59, %v945_v54  ;;  %v1013_v27 = vrot.slane %v959_v49, 6  ;;  %v972_v19 = vrot.slane %v960_v10, 4 }
  0x96   : > { %v706_v28 = vadd.f32 %v703_v33, %v700_v55  ;;  %v998_v34 = vrot.slane %v986_v23, 5  ;;  %v1014_v60 = vrot.slane %v960_v10, 6  ;;  %v999_v37 = vrot.slane %v987_v26, 5 }
  0x97   : > { %v956_v35 = vadd.f32 %v946_v8, %v929_v24  ;;  %v1028_v9 = vrot.slane %v932_v36, 7  ;;  %v1029_v38 = vrot.slane %v933_v2, 7  ;;  %v2692_v62 = vmul.f32 0.1093607, %v2663_v4 }
  0x98   : > { %v721_v39 = vadd.f32 %v715_v7, %v706_v28  ;;  %v973_v16 = vsel %vm289_vm1, %v971_v11, %v972_v19  ;;  %v1015_v20 = vsel %vm333_vm3, %v1013_v27, %v1014_v60  ;;  %v1000_v6 = vsel %vm317_vm2, %v998_v34, %v999_v37 }
  0x99   : > { %506 = vrot.lane.b32.xlu0 %v2525_v18, %s2274_s25  ;;  %522 = vrot.lane.b32.xlu1 %v2503_v63, %s2275_s27  ;;  %v983_v33 = vadd.f32 %v973_v16, %v956_v35  ;;  %v1043_v42 = vmul.f32 0.036000773, %v2535_v22  ;;  %v1049_v7 = vmul.f32 0.0075987587, %v2535_v22  ;;  %v1064_v45 = vmul.f32 0.0010283804, %v2535_v22 }
  0x9a   : > { %v2703_v44 = vadd.f32 %v730_v46, %v721_v39  ;;  %v900_v36 = vmul.f32 0.0010283804, %v2549_v30  ;;  %v903_v48 = vmul.f32 0.0075987587, %v2549_v30  ;;  %v1030_v18 = vsel %vm349_vm4, %v1028_v9, %v1029_v38 }
  0x9b   : > { %v1010_v2 = vadd.f32 %v1000_v6, %v983_v33  ;;  %v918_v63 = vmul.f32 0.036000773, %v2549_v30  ;;  %v934_v49 = vmul.f32 0.1093607, %v2549_v30  ;;  %v1055_v52 = vrot.slane %v1049_v7, 1 }
  0x9c   : > { %v2712_v50 = vmul.f32 0.0075987587, %v2703_v44  ;;  %v1070_v53 = vrot.slane %v1064_v45, 2  ;;  %v909_v46 = vrot.slane %v903_v48, 1  ;;  %v935_v54 = vmul.f32 0.1093607, %v2558_v47 }
  0x9d   : > { %510 = vrot.lane.b32.xlu0 %v2505_v0, %s2274_s25  ;;  %532 = vrot.lane.b32.xlu1 %v2569_v58, %s2276_s12  ;;  %v1025_v22 = vadd.f32 %v1015_v20, %v1010_v2  ;;  %v924_v59 = vrot.slane %v918_v63, 2  ;;  %v947_v55 = vrot.slane %v934_v49, 3  ;;  %v961_v11 = vmul.f32 0.21300554, %v2549_v30 }
  0x9e   : > { %v915_v10 = vadd.f32 %v909_v46, %v900_v36  ;;  %v962_v23 = vmul.f32 0.21300554, %v2558_v47  ;;  %v988_v24 = vmul.f32 0.26601174, %v2549_v30  ;;  %v948_v26 = vrot.slane %v935_v54, 3 }
  0x9f   : > { %v1040_v8 = vadd.f32 %v1030_v18, %v1025_v22  ;;  %v989_v0 = vmul.f32 0.26601174, %v2558_v47  ;;  %v1031_v27 = vrot.slane %v934_v49, 7  ;;  %v974_v19 = vrot.slane %v961_v11, 4 }
  0xa0   : > { %v930_v28 = vadd.f32 %v924_v59, %v915_v10  ;;  %v975_v58 = vrot.slane %v962_v23, 4  ;;  %v1001_v34 = vrot.slane %v988_v24, 5  ;;  %v949_v35 = vsel %vm261_vm0, %v947_v55, %v948_v26 }
  0xa1   : > { %520 = vrot.lane.b32.xlu0 %v2574_v61, %s2275_s27  ;;  %545 = vrot.lane.b32.xlu1 %v2531_v21, %s2277_s21  ;;  %v1046_v60 = vadd.f32 %v1043_v42, %v1040_v8  ;;  %v1002_v30 = vrot.slane %v989_v0, 5  ;;  %v1016_v37 = vrot.slane %v961_v11, 6  ;;  %v1017_v39 = vrot.slane %v962_v23, 6 }
  0xa2   : > { %v957_v9 = vadd.f32 %v949_v35, %v930_v28  ;;  %v976_v38 = vsel %vm289_vm1, %v974_v19, %v975_v58  ;;  %v1032_v16 = vrot.slane %v935_v54, 7  ;;  %v2730_v20 = vmul.f32 0.036000773, %v2703_v44 }
  0xa3   : > { %v1061_v33 = vadd.f32 %v1055_v52, %v1046_v60  ;;  %v1003_v61 = vsel %vm317_vm2, %v1001_v34, %v1002_v30  ;;  %v1050_v6 = vmul.f32 0.0075987587, %v2558_v47  ;;  %v1018_v42 = vsel %vm333_vm3, %v1016_v37, %v1017_v39 }
  0xa4   : > { %v984_v7 = vadd.f32 %v976_v38, %v957_v9  ;;  %v1044_v45 = vmul.f32 0.036000773, %v2558_v47  ;;  %v1065_v36 = vmul.f32 0.0010283804, %v2558_v47  ;;  %v1033_v2 = vsel %vm349_vm4, %v1031_v27, %v1032_v16 }
  0xa5   : > { %530 = vrot.lane.b32.xlu0 %v2521_v15, %s2276_s12  ;;  %549 = vrot.lane.b32.xlu1 %v2518_v13, %s2277_s21  ;;  %v2741_v48 = vadd.f32 %v1070_v53, %v1061_v33  ;;  %v1241_v18 = vmul.f32 0.0010283804, %v2594_v31  ;;  %v1244_v63 = vmul.f32 0.0075987587, %v2594_v31  ;;  %v1056_v52 = vrot.slane %v1050_v6, 1 }
  0xa6   : > { %v1011_v49 = vadd.f32 %v1003_v61, %v984_v7  ;;  %v1259_v46 = vmul.f32 0.036000773, %v2594_v31  ;;  %v1274_v47 = vmul.f32 0.1093607, %v2594_v31  ;;  %v1071_v22 = vrot.slane %v1065_v36, 2 }
  0xa7   : > { %3465 = vst [vmem:[#allocation11_spill] sm:$0xff] %v2741_v48  ;;  %v1250_v59 = vrot.slane %v1244_v63, 1  ;;  %v1275_v15 = vmul.f32 0.1093607, %v2681_v12  ;;  %v1237_v53 = vmul.f32 %v2564_v56, %v2564_v56  ;;  %v1301_v11 = vmul.f32 0.21300554, %v2594_v31 }
  0xa8   : > { %v1026_v54 = vadd.f32 %v1018_v42, %v1011_v49  ;;  %v1265_v55 = vrot.slane %v1259_v46, 2  ;;  %v1286_v10 = vrot.slane %v1274_v47, 3  ;;  %v1302_v8 = vmul.f32 0.21300554, %v2681_v12 }
  0xa9   : > { %534 = vrot.lane.b32.xlu0 %v2492_v41, %s2276_s12  ;;  %748 = vrot.lane.b32.xlu1 %v2674_v43, %s2268_s18  ;;  %v1256_v23 = vadd.f32 %v1250_v59, %v1241_v18  ;;  %v1287_v24 = vrot.slane %v1275_v15, 3  ;;  %v1328_v26 = vmul.f32 0.26601174, %v2594_v31  ;;  %v1313_v27 = vrot.slane %v1301_v11, 4 }
  0xaa   : > { %v1041_v0 = vadd.f32 %v1033_v2, %v1026_v54  ;;  %v1329_v56 = vmul.f32 0.26601174, %v2681_v12  ;;  %v1355_v28 = vrot.slane %v1301_v11, 6  ;;  %v1314_v34 = vrot.slane %v1302_v8, 4 }
  0xab   : > { %v1271_v19 = vadd.f32 %v1265_v55, %v1256_v23  ;;  %v1288_v58 = vsel %vm261_vm0, %v1286_v10, %v1287_v24  ;;  %v1340_v60 = vrot.slane %v1328_v26, 5  ;;  %v1356_v30 = vrot.slane %v1302_v8, 6 }
  0xac   : > { %v1047_v41 = vadd.f32 %v1044_v45, %v1041_v0  ;;  %v1341_v35 = vrot.slane %v1329_v56, 5  ;;  %v1370_v37 = vrot.slane %v1274_v47, 7  ;;  %v2765_v31 = vmul.f32 0.0075987587, %v2741_v48 }
  0xad   : > { %547 = vrot.lane.b32.xlu0 %v2583_v5, %s2277_s21  ;;  %764 = vrot.lane.b32.xlu1 %v2655_v17, %s2269_s16  ;;  %v1298_v9 = vadd.f32 %v1288_v58, %v1271_v19  ;;  %v1315_v38 = vsel %vm289_vm1, %v1313_v27, %v1314_v34  ;;  %v1371_v39 = vrot.slane %v1275_v15, 7  ;;  %v1385_v61 = vmul.f32 0.036000773, %v2681_v12 }
  0xae   : > { %v1062_v16 = vadd.f32 %v1056_v52, %v1047_v41  ;;  %v1342_v33 = vsel %vm317_vm2, %v1340_v60, %v1341_v35  ;;  %v1391_v6 = vmul.f32 0.0075987587, %v2681_v12  ;;  %v1357_v42 = vsel %vm333_vm3, %v1355_v28, %v1356_v30 }
  0xaf   : > { %v1325_v7 = vadd.f32 %v1315_v38, %v1298_v9  ;;  %v1406_v45 = vmul.f32 0.0010283804, %v2681_v12  ;;  %v1238_v36 = vmul.f32 %v2567_v57, %v2567_v57  ;;  %v1372_v18 = vsel %vm349_vm4, %v1370_v37, %v1371_v39 }
  0xb0   : > { %v2775_v2 = vadd.f32 %v1071_v22, %v1062_v16  ;;  %v1242_v63 = vmul.f32 0.0010283804, %v1237_v53  ;;  %v1245_v49 = vmul.f32 0.0075987587, %v1237_v53  ;;  %v1397_v46 = vrot.slane %v1391_v6, 1 }
  0xb1   : > { %746 = vrot.lane.b32.xlu0 %v2643_v32, %s2268_s18  ;;  %768 = vrot.lane.b32.xlu1 %v2730_v20, %s2269_s16  ;;  %v1352_v52 = vadd.f32 %v1342_v33, %v1325_v7  ;;  %v1260_v47 = vmul.f32 0.036000773, %v1237_v53  ;;  %v1276_v59 = vmul.f32 0.1093607, %v1237_v53  ;;  %v1412_v57 = vrot.slane %v1406_v45, 2 }
  0xb2   : > { %v2783_v12 = vmul.f32 0.0075987587, %v2775_v2  ;;  %v1251_v22 = vrot.slane %v1245_v49, 1  ;;  %v1277_v15 = vmul.f32 0.1093607, %v1238_v36  ;;  %v898_v39 = vmul.f32 %v2445_v1, %v2445_v1 }
  0xb3   : > { %v1367_v54 = vadd.f32 %v1357_v42, %v1352_v52  ;;  %v1266_v55 = vrot.slane %v1260_v47, 2  ;;  %v1289_v10 = vrot.slane %v1276_v59, 3  ;;  %v1303_v11 = vmul.f32 0.21300554, %v1237_v53 }
  0xb4   : > { %v1257_v23 = vadd.f32 %v1251_v22, %v1242_v63  ;;  %v1290_v24 = vrot.slane %v1277_v15, 3  ;;  %v1304_v8 = vmul.f32 0.21300554, %v1238_v36  ;;  %v1330_v26 = vmul.f32 0.26601174, %v1237_v53 }
  0xb5   : > { %750 = vrot.lane.b32.xlu0 %v2712_v50, %s2268_s18  ;;  %784 = vrot.lane.b32.xlu1 %v2692_v62, %s2270_s23  ;;  %v1382_v0 = vadd.f32 %v1372_v18, %v1367_v54  ;;  %v1316_v27 = vrot.slane %v1303_v11, 4  ;;  %v1331_v56 = vmul.f32 0.26601174, %v1238_v36  ;;  %v1358_v28 = vrot.slane %v1303_v11, 6 }
  0xb6   : > { %v1272_v19 = vadd.f32 %v1266_v55, %v1257_v23  ;;  %v1291_v58 = vsel %vm261_vm0, %v1289_v10, %v1290_v24  ;;  %v1317_v34 = vrot.slane %v1304_v8, 4  ;;  %v1343_v60 = vrot.slane %v1330_v26, 5 }
  0xb7   : > { %v1388_v41 = vadd.f32 %v1385_v61, %v1382_v0  ;;  %v1344_v35 = vrot.slane %v1331_v56, 5  ;;  %v1359_v30 = vrot.slane %v1304_v8, 6  ;;  %v1373_v37 = vrot.slane %v1276_v59, 7 }
  0xb8   : > { %v1299_v53 = vadd.f32 %v1291_v58, %v1272_v19  ;;  %v1318_v9 = vsel %vm289_vm1, %v1316_v27, %v1317_v34  ;;  %v1374_v38 = vrot.slane %v1277_v15, 7  ;;  %v1386_v61 = vmul.f32 0.036000773, %v1238_v36 }
  0xb9   : > { %766 = vrot.lane.b32.xlu0 %v2677_v51, %s2269_s16  ;;  %1090 = vrot.lane.b32.xlu1 %v2783_v12, %s2268_s18  ;;  %v1403_v16 = vadd.f32 %v1397_v46, %v1388_v41  ;;  %v1345_v33 = vsel %vm317_vm2, %v1343_v60, %v1344_v35  ;;  %v1392_v6 = vmul.f32 0.0075987587, %v1238_v36  ;;  %v1360_v42 = vsel %vm333_vm3, %v1358_v28, %v1359_v30 }
  0xba   : > { %v1326_v7 = vadd.f32 %v1318_v9, %v1299_v53  ;;  %v1375_v45 = vsel %vm349_vm4, %v1373_v37, %v1374_v38  ;;  %v1407_v18 = vmul.f32 0.0010283804, %v1238_v36  ;;  %v901_v1 = vmul.f32 0.0010283804, %v2455_v29 }
  0xbb   : > { %v2800_v63 = vadd.f32 %v1412_v57, %v1403_v16  ;;  %v904_v49 = vmul.f32 0.0075987587, %v2455_v29  ;;  %v919_v52 = vmul.f32 0.036000773, %v2455_v29  ;;  %v1398_v46 = vrot.slane %v1392_v6, 1 }
  0xbc   : > { %v1353_v47 = vadd.f32 %v1345_v33, %v1326_v7  ;;  %v936_v59 = vmul.f32 0.1093607, %v2455_v29  ;;  %v937_v22 = vmul.f32 0.1093607, %v898_v39  ;;  %v963_v54 = vmul.f32 0.21300554, %v2455_v29 }
  0xbd   : > { %3466 = vst [vmem:[#allocation12_spill] sm:$0xff] %v2800_v63  ;;  %782 = vrot.lane.b32.xlu0 %v2658_v40, %s2270_s23  ;;  %v2809_v15 = vmul.f32 0.0075987587, %v2800_v63  ;;  %v910_v36 = vrot.slane %v904_v49, 1  ;;  %v925_v57 = vrot.slane %v919_v52, 2  ;;  %v1413_v30 = vrot.slane %v1407_v18, 2 }
  0xbe   : > { %v1368_v55 = vadd.f32 %v1360_v42, %v1353_v47  ;;  %v950_v10 = vrot.slane %v936_v59, 3  ;;  %v951_v11 = vrot.slane %v937_v22, 3  ;;  %v964_v23 = vmul.f32 0.21300554, %v898_v39 }
  0xbf   : > { %v916_v24 = vadd.f32 %v910_v36, %v901_v1  ;;  %v977_v8 = vrot.slane %v963_v54, 4  ;;  %v990_v26 = vmul.f32 0.26601174, %v2455_v29  ;;  %v991_v0 = vmul.f32 0.26601174, %v898_v39 }
  0xc0   : > { %v1383_v27 = vadd.f32 %v1375_v45, %v1368_v55  ;;  %v952_v56 = vsel %vm261_vm0, %v950_v10, %v951_v11  ;;  %v978_v28 = vrot.slane %v964_v23, 4  ;;  %v1019_v19 = vrot.slane %v963_v54, 6 }
  0xc1   : > { %1088 = vrot.lane.b32.xlu0 %v2765_v31, %s2268_s18  ;;  %v931_v58 = vadd.f32 %v925_v57, %v916_v24  ;;  %v1004_v34 = vrot.slane %v990_v26, 5  ;;  %v1005_v60 = vrot.slane %v991_v0, 5  ;;  %v1020_v41 = vrot.slane %v964_v23, 6 }
  0xc2   : > { %v1389_v35 = vadd.f32 %v1386_v61, %v1383_v27  ;;  %v979_v37 = vsel %vm289_vm1, %v977_v8, %v978_v28  ;;  %v1034_v9 = vrot.slane %v936_v59, 7  ;;  %v1035_v29 = vrot.slane %v937_v22, 7 }
  0xc3   : > { %v958_v53 = vadd.f32 %v952_v56, %v931_v58  ;;  %v1006_v16 = vsel %vm317_vm2, %v1004_v34, %v1005_v60  ;;  %v1021_v33 = vsel %vm333_vm3, %v1019_v19, %v1020_v41  ;;  %v1051_v6 = vmul.f32 0.0075987587, %v898_v39 }
  0xc4   : > { %v1404_v38 = vadd.f32 %v1398_v46, %v1389_v35  ;;  %v1045_v42 = vmul.f32 0.036000773, %v898_v39  ;;  %v1066_v45 = vmul.f32 0.0010283804, %v898_v39  ;;  %v1239_v61 = vmul.f32 %v2611_v3, %v2611_v3 }
  0xc5   : > { %1430 = vrot.lane.b32.xlu0 %v2809_v15, %s2268_s18  ;;  %v985_v7 = vadd.f32 %v979_v37, %v958_v53  ;;  %v1057_v1 = vrot.slane %v1051_v6, 1  ;;  %v2826_v49 = vmul.f32 0.036000773, %v2741_v48  ;;  %v1240_v52 = vmul.f32 %v2617_v25, %v2617_v25 }
  0xc6   : > { %v2823_v18 = vadd.f32 %v1413_v30, %v1404_v38  ;;  %v1243_v46 = vmul.f32 0.0010283804, %v1239_v61  ;;  %v1246_v59 = vmul.f32 0.0075987587, %v1239_v61  ;;  %v1261_v22 = vmul.f32 0.036000773, %v1239_v61 }
  0xc7   : > { %v1012_v47 = vadd.f32 %v1006_v16, %v985_v7  ;;  %v1036_v39 = vsel %vm349_vm4, %v1034_v9, %v1035_v29  ;;  %v1278_v57 = vmul.f32 0.1093607, %v1239_v61  ;;  %v1279_v3 = vmul.f32 0.1093607, %v1240_v52 }
  0xc8   : > { %v2831_v36 = vmul.f32 0.0075987587, %v2823_v18  ;;  %v1252_v55 = vrot.slane %v1246_v59, 1  ;;  %v1267_v10 = vrot.slane %v1261_v22, 2  ;;  %v1305_v11 = vmul.f32 0.21300554, %v1239_v61 }
  0xc9   : > { %v1027_v54 = vadd.f32 %v1021_v33, %v1012_v47  ;;  %v1292_v23 = vrot.slane %v1278_v57, 3  ;;  %v1293_v25 = vrot.slane %v1279_v3, 3  ;;  %v1306_v24 = vmul.f32 0.21300554, %v1240_v52 }
  0xca   : > { %1432 = vrot.lane.b32.xlu1 %v2831_v36, %s2268_s18  ;;  %v1332_v8 = vmul.f32 0.26601174, %v1239_v61  ;;  %v1258_v0 = vadd.f32 %v1252_v55, %v1243_v46  ;;  %v1319_v27 = vrot.slane %v1305_v11, 4  ;;  %v1333_v56 = vmul.f32 0.26601174, %v1240_v52 }
  0xcb   : > { %v1042_v26 = vadd.f32 %v1036_v39, %v1027_v54  ;;  %v1294_v28 = vsel %vm261_vm0, %v1292_v23, %v1293_v25  ;;  %v1320_v19 = vrot.slane %v1306_v24, 4  ;;  %v1072_v60 = vrot.slane %v1066_v45, 2 }
  0xcc   : > { %v1346_v58 = vrot.slane %v1332_v8, 5  ;;  %v1273_v41 = vadd.f32 %v1267_v10, %v1258_v0  ;;  %v1347_v35 = vrot.slane %v1333_v56, 5  ;;  %v1361_v37 = vrot.slane %v1305_v11, 6 }
  0xcd   : > { %v1048_v34 = vadd.f32 %v1045_v42, %v1042_v26  ;;  %v1321_v30 = vsel %vm289_vm1, %v1319_v27, %v1320_v19  ;;  %v1362_v53 = vrot.slane %v1306_v24, 6  ;;  %v1376_v16 = vrot.slane %v1278_v57, 7 }
  0xce   : > { %1106 = vrot.lane.b32.xlu1 %v2826_v49, %s2269_s16  ;;  %v1300_v29 = vadd.f32 %v1294_v28, %v1273_v41  ;;  %v1348_v38 = vsel %vm317_vm2, %v1346_v58, %v1347_v35  ;;  %v1377_v33 = vrot.slane %v1279_v3, 7  ;;  %v1393_v47 = vmul.f32 0.0075987587, %v1240_v52 }
  0xcf   : > { %v1063_v9 = vadd.f32 %v1057_v1, %v1048_v34  ;;  %v1363_v42 = vsel %vm333_vm3, %v1361_v37, %v1362_v53  ;;  %v2851_v1 = vmul.f32 0.036000773, %v2775_v2  ;;  %v1387_v22 = vmul.f32 0.036000773, %v1240_v52 }
  0xd0   : > { %v1327_v7 = vadd.f32 %v1321_v30, %v1300_v29  ;;  %v1378_v46 = vsel %vm349_vm4, %v1376_v16, %v1377_v33  ;;  %v1408_v39 = vmul.f32 0.0010283804, %v1240_v52  ;;  %v1399_v3 = vrot.slane %v1393_v47, 1 }
  0xd1   : > { %v2841_v6 = vadd.f32 %v1072_v60, %v1063_v9  ;;  %v2856_v10 = vmul.f32 0.036000773, %v2800_v63  ;;  %v2865_v52 = vmul.f32 0.1093607, %v2703_v44  ;;  %v2873_v8 = vmul.f32 0.036000773, %v2823_v18 }
  0xd2   : > { %v1354_v61 = vadd.f32 %v1348_v38, %v1327_v7  ;;  %v1414_v55 = vrot.slane %v1408_v39, 2  ;;  %v795_v26 = vmul.f32 0.21300554, %v2663_v4  ;;  %v794_v27 = vmul.f32 0.21300554, %v2628_v14 }
  0xd3   : > { %v2845_v45 = vmul.f32 0.0075987587, %v2841_v6  ;;  %v2885_v56 = vmul.f32 0.1093607, %v2741_v48  ;;  %v2893_v58 = vmul.f32 0.036000773, %v2841_v6 }
  0xd4   : > { %v1369_v59 = vadd.f32 %v1363_v42, %v1354_v61  ;;  %v2907_v35 = vmul.f32 0.1093607, %v2775_v2  ;;  %v2912_v30 = vmul.f32 0.1093607, %v2823_v18  ;;  %v2921_v9 = vmul.f32 0.1093607, %v2800_v63 }
  0xd5   : > { %3467 = vst [vmem:[#allocation13_spill] sm:$0xff] %v2845_v45  ;;  %1092 = vrot.lane.b32.xlu0 %v2845_v45, %s2268_s18  ;;  %v812_v29 = vmul.f32 0.26601174, %v2628_v14  ;;  %v796_v33 = vmul.f32 0.21300554, %v2703_v44  ;;  %vm1973_vm5 = vcmask 46080  }
  0xd6   : > { %v1384_v57 = vadd.f32 %v1378_v46, %v1369_v59  ;;  %v2935_v7 = vmul.f32 0.1093607, %v2841_v6  ;;  %v813_v47 = vmul.f32 0.26601174, %v2663_v4  ;;  %v2946_v46 = vmul.f32 0.21300554, %v2775_v2 }
  0xd7   : > { %v2954_v39 = vmul.f32 0.21300554, %v2741_v48  ;;  %vm1989_vm6 = vcmask 0  }
  0xd8   : > { %v1390_v54 = vadd.f32 %v1387_v22, %v1384_v57  ;;  %v2959_v57 = vmul.f32 0.21300554, %v2800_v63 }
  0xd9   : > { %1108 = vrot.lane.b32.xlu0 %v2851_v1, %s2269_s16  ;;  %v2858_v23 = vpop.permute.xlu1 %414 }
  0xda   : > { %v1405_v11 = vadd.f32 %v1399_v3, %v1390_v54  ;;  %3468 = vst [vmem:[#allocation14_spill] sm:$0xff] %v2858_v23 }
  0xdc   : > { %v2860_v25 = vadd.f32 %v1414_v55, %v1405_v11  ;;  %v814_v11 = vmul.f32 0.26601174, %v2703_v44 }
  0xdd   : > { %1448 = vrot.lane.b32.xlu0 %v2856_v10, %s2269_s16 }
  0xde   : > { %v2868_v24 = vmul.f32 0.0075987587, %v2860_v25  ;;  %v2898_v34 = vmul.f32 0.036000773, %v2860_v25  ;;  %v2968_v55 = vmul.f32 0.1093607, %v2860_v25 }
  0xe0   : > { %3469 = vst [vmem:[#allocation15_spill] sm:$0xff] %v2868_v24  ;;  %1434 = vrot.lane.b32.xlu1 %v2868_v24, %s2268_s18 }
  0xe1   : > { %786 = vrot.lane.b32.xlu0 %v2865_v52, %s2270_s23  ;;  %v2878_v0 = vpop.permute.xlu1 %428  ;;  %v2887_v28 = vpop.permute.xlu0 %410 }
  0xe2   : > { %3470 = vst [vmem:[#allocation16_spill] sm:$0xff] %v2878_v0  ;;  %3471 = vst [vmem:[#allocation17_spill] sm:$0xff] %v2887_v28  ;;  %v2999_v28 = vmul.f32 0.21300554, %v2860_v25 }
  0xe4   : > { %1450 = vrot.lane.b32.xlu1 %v2873_v8, %s2269_s16 }
  0xe5   : > { %802 = vrot.lane.b32.xlu0 %v795_v26, %s2271_s29  ;;  %v2889_v19 = vpop.permute.xlu1 %432 }
  0xe6   : > { %3472 = vst [vmem:[#allocation18_spill] sm:$0xff] %v2889_v19 }
  0xe8   : > { %800 = vrot.lane.b32.xlu1 %v794_v27, %s2271_s29 }
  0xe9   : > { %1124 = vrot.lane.b32.xlu0 %v2885_v56, %s2270_s23 }
  0xeb   : > { %v2900_v60 = vpop.permute.xlu0 %412  ;;  %v2902_v41 = vpop.permute.xlu1 %448 }
  0xec   : > { %3473 = vst [vmem:[#allocation19_spill] sm:$0xff] %v2900_v60  ;;  %3474 = vst [vmem:[#allocation20_spill] sm:$0xff] %v2902_v41  ;;  %1110 = vrot.lane.b32.xlu1 %v2893_v58, %s2269_s16 }
  0xed   : > { %1452 = vrot.lane.b32.xlu0 %v2898_v34, %s2269_s16 }
  0xef   : > { %v2914_v37 = vpop.permute.xlu0 %430  ;;  %v2916_v53 = vpop.permute.xlu1 %464 }
  0xf0   : > { %3475 = vst [vmem:[#allocation21_spill] sm:$0xff] %v2914_v37  ;;  %3476 = vst [vmem:[#allocation22_spill] sm:$0xff] %v2916_v53  ;;  %1126 = vrot.lane.b32.xlu1 %v2907_v35, %s2270_s23  ;;  %v1154_v53 = vmul.f32 0.26601174, %v2741_v48  ;;  %v2165_v48 = vld [vmem:[%s2437_s3 + $0x20] sm:$0xff] }
  0xf1   : > { %1468 = vrot.lane.b32.xlu0 %v2912_v30, %s2270_s23 }
  0xf3   : > { %v2926_v38 = vpop.permute.xlu0 %446  ;;  %v2928_v16 = vpop.permute.xlu1 %468 }
  0xf4   : > { %3477 = vst [vmem:[#allocation23_spill] sm:$0xff] %v2926_v38  ;;  %3478 = vst [vmem:[#allocation24_spill] sm:$0xff] %v2928_v16  ;;  %1466 = vrot.lane.b32.xlu1 %v2921_v9, %s2270_s23 }
  0xf5   : > { %818 = vrot.lane.b32.xlu0 %v812_v29, %s2272_s30 }
  0xf7   : > { %v2937_v42 = vpop.permute.xlu0 %450  ;;  %v2939_v61 = vpop.permute.xlu1 %484 }
  0xf8   : > { %3479 = vst [vmem:[#allocation25_spill] sm:$0xff] %v2937_v42  ;;  %3480 = vst [vmem:[#allocation26_spill] sm:$0xff] %v2939_v61  ;;  %804 = vrot.lane.b32.xlu1 %v796_v33, %s2271_s29 }
  0xf9   : > { %1128 = vrot.lane.b32.xlu0 %v2935_v7, %s2270_s23 }
  0xfb   : > { %v2948_v59 = vpop.permute.xlu0 %466  ;;  %v2950_v22 = vpop.permute.xlu1 %494 }
  0xfc   : > { %3481 = vst [vmem:[#allocation27_spill] sm:$0xff] %v2948_v59  ;;  %3482 = vst [vmem:[#allocation28_spill] sm:$0xff] %v2950_v22  ;;  %820 = vrot.lane.b32.xlu1 %v813_v47, %s2272_s30  ;;  %v2978_v47 = vmul.f32 0.21300554, %v2823_v18 }
  0xfd   : > { %1144 = vrot.lane.b32.xlu0 %v2946_v46, %s2271_s29 }
  0xff   : > { %v2961_v3 = vpop.permute.xlu0 %482  ;;  %v2963_v54 = vpop.permute.xlu1 %498 }
 0x100   : > { %3483 = vst [vmem:[#allocation29_spill] sm:$0xff] %v2961_v3  ;;  %3484 = vst [vmem:[#allocation30_spill] sm:$0xff] %v2963_v54  ;;  %1142 = vrot.lane.b32.xlu1 %v2954_v39, %s2271_s29  ;;  %v2157_v54 = vld [vmem:[%s2437_s3] sm:$0xff] }
 0x101   : > { %1484 = vrot.lane.b32.xlu0 %v2959_v57, %s2271_s29 }
 0x103   : > { %v2973_v29 = vpop.permute.xlu0 %486  ;;  %v2981_v22 = vpop.permute.xlu1 %508 }
 0x104   : > { %3485 = vst [vmem:[#allocation31_spill] sm:$0xff] %v2973_v29  ;;  %1470 = vrot.lane.b32.xlu1 %v2968_v55, %s2270_s23  ;;  %3486 = vst [vmem:[#allocation32_spill] sm:$0xff] %v2981_v22 }
 0x105   : > { %822 = vrot.lane.b32.xlu0 %v814_v11, %s2272_s30  ;;  %v2995_v11 = vmul.f32 0.21300554, %v2841_v6 }
 0x107   : > { %v2983_v3 = vpop.permute.xlu0 %496  ;;  %v2991_v0 = vpop.permute.xlu1 %518 }
 0x108   : > { %3487 = vst [vmem:[#allocation33_spill] sm:$0xff] %v2983_v3  ;;  %1486 = vrot.lane.b32.xlu1 %v2978_v47, %s2271_s29  ;;  %3489 = vst [vmem:[#allocation35_spill] sm:$0xff] %v2991_v0 }
 0x109   : > { %832 = vrot.lane.b32.xlu0 %v795_v26, %s2273_s4  ;;  %v1155_v26 = vmul.f32 0.26601174, %v2775_v2 }
 0x10b   : > { %v2989_v38 = vpop.permute.xlu0 %506  ;;  %v3009_v0 = vpop.permute.xlu1 %522 }
 0x10c   : > { %3488 = vst [vmem:[#allocation34_spill] sm:$0xff] %v2989_v38  ;;  %830 = vrot.lane.b32.xlu1 %v794_v27, %s2273_s4  ;;  %v1497_v27 = vmul.f32 0.26601174, %v2823_v18  ;;  %3491 = vst [vmem:[#allocation37_spill] sm:$0xff] %v3009_v0  ;;  %v2156_v38 = vld [vmem:[%s2431_s26] sm:$0xff] }
 0x10d   : > { %1160 = vrot.lane.b32.xlu0 %v1154_v53, %s2272_s30  ;;  %v1577_v29 = vmul.f32 %v2157_v54, %v2156_v38  ;;  %v1156_v38 = vmul.f32 0.26601174, %v2841_v6  ;;  %v2158_v54 = vld [vmem:[%s2431_s26 + $0x8] sm:$0xff] }
 0x10f   : > { %v3001_v21 = vpop.permute.xlu0 %510  ;;  %v3018_v16 = vpop.permute.xlu1 %532  ;;  %v1586_v19 = vmul.f32 0.0075987587, %v1577_v29 }
 0x110   : > { %3490 = vst [vmem:[#allocation36_spill] sm:$0xff] %v3001_v21  ;;  %1146 = vrot.lane.b32.xlu1 %v2995_v11, %s2271_s29  ;;  %v1496_v21 = vmul.f32 0.26601174, %v2800_v63  ;;  %3493 = vst [vmem:[#allocation39_spill] sm:$0xff] %v3018_v16  ;;  %v1601_v16 = vmul.f32 0.036000773, %v1577_v29 }
 0x111   : > { %1488 = vrot.lane.b32.xlu0 %v2999_v28, %s2271_s29  ;;  %v1592_v13 = vrot.slane %v1586_v19, 1  ;;  %v3045_v19 = vmul.f32 0.21300554, %v1577_v29 }
 0x113   : > { %v3011_v53 = vpop.permute.xlu0 %520 }
 0x114   : > { %3492 = vst [vmem:[#allocation38_spill] sm:$0xff] %v3011_v53  ;;  %1162 = vrot.lane.b32.xlu1 %v1155_v26, %s2272_s30  ;;  %v2159_v26 = vld [vmem:[%s2437_s3 + $0x8] sm:$0xff] }
 0x115   : > { %1504 = vrot.lane.b32.xlu0 %v1497_v27, %s2272_s30  ;;  %v3028_v0 = vmul.f32 %v2159_v26, %v2158_v54  ;;  %v1583_v27 = vmul.f32 0.0010283804, %v1577_v29  ;;  %v2160_v54 = vld [vmem:[%s2431_s26 + $0x10] sm:$0xff] }
 0x116   : > { %v2161_v26 = vld [vmem:[%s2437_s3 + $0x10] sm:$0xff] }
 0x117   : > { %v3020_v42 = vpop.permute.xlu0 %530  ;;  %v1579_v53 = vmul.f32 %v2161_v26, %v2160_v54  ;;  %v1598_v22 = vadd.f32 %v1592_v13, %v1583_v27  ;;  %v2162_v54 = vld [vmem:[%s2431_s26 + $0x18] sm:$0xff]  ;;  %v1498_v13 = vmul.f32 0.26601174, %v2860_v25  ;;  %v1671_v37 = vmul.f32 0.26601174, %v3028_v0 }
 0x118   : > { %3494 = vst [vmem:[#allocation40_spill] sm:$0xff] %v3020_v42  ;;  %1502 = vrot.lane.b32.xlu1 %v1496_v21, %s2272_s30  ;;  %v3034_v21 = vpop.permute.xlu1 %545  ;;  %v3036_v42 = vmul.f32 0.1093607, %v1577_v29  ;;  %v2163_v26 = vld [vmem:[%s2437_s3 + $0x18] sm:$0xff] }
 0x119   : > { %842 = vrot.lane.b32.xlu0 %v2658_v40, %s2274_s25  ;;  %3496 = vst [vmem:[#allocation42_spill] sm:$0xff] %v3034_v21  ;;  %v3039_v40 = vmul.f32 0.1093607, %v3028_v0  ;;  %v1587_v61 = vmul.f32 0.0075987587, %v1579_v53 }
 0x11a   : > { %v1628_v21 = vrot.slane %v3036_v42, 3  ;;  %v3070_v5 = vmul.f32 0.1093607, %v1579_v53  ;;  %v1645_v45 = vmul.f32 0.21300554, %v1579_v53 }
 0x11b   : > { %v3030_v23 = vpop.permute.xlu0 %534  ;;  %v1629_v3 = vrot.slane %v3039_v40, 3  ;;  %v1593_v60 = vrot.slane %v1587_v61, 1  ;;  %v1683_v61 = vrot.slane %v1671_v37, 5 }
 0x11c   : > { %3495 = vst [vmem:[#allocation41_spill] sm:$0xff] %v3030_v23  ;;  %834 = vrot.lane.b32.xlu1 %v796_v33, %s2273_s4  ;;  %v1607_v33 = vrot.slane %v1601_v16, 2  ;;  %v3059_v16 = vpop.permute.xlu1 %549  ;;  %v1631_v63 = vrot.slane %v3070_v5, 3 }
 0x11d   : > { %1164 = vrot.lane.b32.xlu0 %v1156_v38, %s2272_s30  ;;  %v1644_v38 = vmul.f32 0.21300554, %v3028_v0  ;;  %3498 = vst [vmem:[#allocation44_spill] sm:$0xff] %v3059_v16  ;;  %v1602_v16 = vmul.f32 0.036000773, %v1579_v53 }
 0x11e   : > { %v1613_v59 = vadd.f32 %v1607_v33, %v1598_v22 }
 0x11f   : > { %v3043_v23 = vpop.permute.xlu0 %547  ;;  %v1656_v41 = vrot.slane %v1644_v38, 4 }
 0x120   : > { %3497 = vst [vmem:[#allocation43_spill] sm:$0xff] %v3043_v23  ;;  %844 = vrot.lane.b32.xlu1 %v2692_v62, %s2274_s25  ;;  %v3056_v23 = vmul.f32 %v2163_v26, %v2162_v54  ;;  %v1655_v62 = vrot.slane %v3045_v19, 4  ;;  %v1630_v54 = vsel %vm261_vm0, %v1628_v21, %v1629_v3  ;;  %v1584_v26 = vmul.f32 0.0010283804, %v1579_v53 }
 0x121   : > { %1174 = vrot.lane.b32.xlu0 %v2946_v46, %s2273_s4  ;;  %v1670_v46 = vmul.f32 0.26601174, %v1577_v29  ;;  %v1640_v22 = vadd.f32 %v1630_v54, %v1613_v59  ;;  %v1608_v21 = vrot.slane %v1602_v16, 2  ;;  %v1658_v16 = vrot.slane %v1645_v45, 4 }
 0x122   : > { %v3073_v24 = vmul.f32 0.1093607, %v3056_v23  ;;  %v1657_v29 = vsel %vm289_vm1, %v1655_v62, %v1656_v41  ;;  %v1599_v3 = vadd.f32 %v1593_v60, %v1584_v26  ;;  %v1646_v41 = vmul.f32 0.21300554, %v3056_v23 }
 0x123   : > { %v3061_v27 = vpop.permute.xlu0 %746  ;;  %v1682_v33 = vrot.slane %v1670_v46, 5  ;;  %v1667_v62 = vadd.f32 %v1657_v29, %v1640_v22  ;;  %v1698_v60 = vrot.slane %v1644_v38, 6  ;;  %v1672_v26 = vmul.f32 0.26601174, %v1579_v53 }
 0x124   : > { %1172 = vrot.lane.b32.xlu1 %v2954_v39, %s2273_s4  ;;  %v3079_v39 = vpop.permute.xlu1 %748  ;;  %v1632_v59 = vrot.slane %v3073_v24, 3  ;;  %v1614_v37 = vadd.f32 %v1608_v21, %v1599_v3  ;;  %v1659_v54 = vrot.slane %v1646_v41, 4  ;;  %v1673_v22 = vmul.f32 0.26601174, %v3056_v23 }
 0x125   : > { %1514 = vrot.lane.b32.xlu0 %v2959_v57, %s2273_s4  ;;  %3499 = vst [vmem:[#allocation45_spill] sm:$0xff] %v3079_v39  ;;  %v1713_v53 = vrot.slane %v3039_v40, 7  ;;  %v1700_v21 = vrot.slane %v1645_v45, 6  ;;  %v2167_v45 = vld [vmem:[%s2437_s3 + $0x28] sm:$0xff] }
 0x126   : > { %v1633_v46 = vsel %vm261_vm0, %v1631_v63, %v1632_v59  ;;  %v1712_v63 = vrot.slane %v3036_v42, 7  ;;  %v1701_v59 = vrot.slane %v1646_v41, 6 }
 0x127   : > { %v3081_v57 = vpop.permute.xlu0 %750  ;;  %v1641_v38 = vadd.f32 %v1633_v46, %v1614_v37 }
 0x128   : > { %1506 = vrot.lane.b32.xlu1 %v1498_v13, %s2272_s30  ;;  %3500 = vst [vmem:[#allocation46_spill] sm:$0xff] %v3081_v57  ;;  %v1697_v13 = vrot.slane %v3045_v19, 6  ;;  %v3094_v29 = vpop.permute.xlu1 %764  ;;  %v1714_v42 = vsel %vm349_vm4, %v1712_v63, %v1713_v53 }
 0x129   : > { %846 = vrot.lane.b32.xlu0 %v2865_v52, %s2274_s25  ;;  %v1684_v52 = vsel %vm317_vm2, %v1682_v33, %v1683_v61  ;;  %v1660_v33 = vsel %vm289_vm1, %v1658_v16, %v1659_v54  ;;  %v1685_v61 = vrot.slane %v1672_v26, 5  ;;  %v1715_v26 = vrot.slane %v3070_v5, 7 }
 0x12a   : > { %v1694_v57 = vadd.f32 %v1684_v52, %v1667_v62  ;;  %v1668_v40 = vadd.f32 %v1660_v33, %v1641_v38  ;;  %v1748_v38 = vmul.f32 0.0010283804, %v3028_v0 }
 0x12b   : > { %v3096_v19 = vpop.permute.xlu0 %766 }
 0x12c   : > { %1516 = vrot.lane.b32.xlu1 %v2978_v47, %s2273_s4  ;;  %v2164_v47 = vld [vmem:[%s2431_s26 + $0x20] sm:$0xff] }
 0x12d   : > { %856 = vrot.lane.b32.xlu0 %v2677_v51, %s2275_s27  ;;  %v3100_v39 = vmul.f32 %v2165_v48, %v2164_v47  ;;  %v1699_v51 = vsel %vm333_vm3, %v1697_v13, %v1698_v60  ;;  %v1686_v48 = vrot.slane %v1673_v22, 5  ;;  %v1702_v60 = vsel %vm333_vm3, %v1700_v21, %v1701_v59 }
 0x12e   : > { %v1709_v3 = vadd.f32 %v1699_v51, %v1694_v57  ;;  %v2166_v57 = vld [vmem:[%s2431_s26 + $0x28] sm:$0xff]  ;;  %v1716_v22 = vrot.slane %v3073_v24, 7 }
 0x12f   : > { %v1588_v62 = vmul.f32 0.0075987587, %v3100_v39  ;;  %v1687_v13 = vsel %vm317_vm2, %v1685_v61, %v1686_v48  ;;  %v3123_v41 = vmul.f32 %v2167_v45, %v2166_v57  ;;  %v1585_v16 = vmul.f32 0.0010283804, %v3100_v39 }
 0x130   : > { %854 = vrot.lane.b32.xlu1 %v2655_v17, %s2275_s27  ;;  %v3114_v17 = vpop.permute.xlu1 %768  ;;  %v1724_v52 = vadd.f32 %v1714_v42, %v1709_v3  ;;  %v1695_v37 = vadd.f32 %v1687_v13, %v1668_v40  ;;  %v1603_v54 = vmul.f32 0.036000773, %v3100_v39  ;;  %v3137_v47 = vmul.f32 0.1093607, %v3100_v39 }
 0x131   : > { %1184 = vrot.lane.b32.xlu0 %v2885_v56, %s2274_s25  ;;  %v3116_v56 = vpop.permute.xlu0 %782  ;;  %v1594_v46 = vrot.slane %v1588_v62, 1  ;;  %v3140_v51 = vmul.f32 0.1093607, %v3123_v41  ;;  %v1647_v61 = vmul.f32 0.21300554, %v3100_v39  ;;  %v1717_v48 = vsel %vm349_vm4, %v1715_v26, %v1716_v22 }
 0x132   : > { %v1710_v5 = vadd.f32 %v1702_v60, %v1695_v37  ;;  %v1609_v33 = vrot.slane %v1603_v54, 2  ;;  %v1634_v3 = vrot.slane %v3137_v47, 3  ;;  %v1648_v59 = vmul.f32 0.21300554, %v3123_v41 }
 0x133   : > { %v1600_v24 = vadd.f32 %v1594_v46, %v1585_v16  ;;  %v1635_v21 = vrot.slane %v3140_v51, 3  ;;  %v1728_v42 = vmul.f32 0.036000773, %v3056_v23  ;;  %v1661_v45 = vrot.slane %v1647_v61, 4 }
 0x134   : > { %1176 = vrot.lane.b32.xlu1 %v2995_v11, %s2273_s4  ;;  %v1727_v11 = vmul.f32 0.036000773, %v3028_v0  ;;  %v1725_v13 = vadd.f32 %v1717_v48, %v1710_v5  ;;  %v1675_v60 = vmul.f32 0.26601174, %v3123_v41  ;;  %v1703_v5 = vrot.slane %v1647_v61, 6 }
 0x135   : > { %1518 = vrot.lane.b32.xlu0 %v2999_v28, %s2273_s4  ;;  %v1733_v28 = vmul.f32 0.0075987587, %v3028_v0  ;;  %v3144_v63 = vpop.permute.xlu0 %1088  ;;  %v1754_v0 = vrot.slane %v1748_v38, 2  ;;  %v1615_v57 = vadd.f32 %v1609_v33, %v1600_v24  ;;  %v1704_v24 = vrot.slane %v1648_v59, 6 }
 0x136   : > { %v1731_v37 = vadd.f32 %v1728_v42, %v1725_v13  ;;  %v1689_v22 = vrot.slane %v1675_v60, 5  ;;  %v1719_v61 = vrot.slane %v3140_v51, 7  ;;  %v1729_v51 = vmul.f32 0.036000773, %v3123_v41 }
 0x137   : > { %v1739_v53 = vrot.slane %v1733_v28, 1  ;;  %v1674_v28 = vmul.f32 0.26601174, %v3100_v39  ;;  %v1735_v13 = vmul.f32 0.0075987587, %v3123_v41 }
 0x138   : > { %1186 = vrot.lane.b32.xlu1 %v2907_v35, %s2274_s25  ;;  %v3142_v35 = vpop.permute.xlu1 %784 }
 0x139   : > { %1528 = vrot.lane.b32.xlu0 %v2912_v30, %s2274_s25  ;;  %v1730_v30 = vadd.f32 %v1727_v11, %v1724_v52  ;;  %v3164_v40 = vpop.permute.xlu0 %1430  ;;  %v1636_v52 = vsel %vm261_vm0, %v1634_v3, %v1635_v21  ;;  %v1662_v11 = vrot.slane %v1648_v59, 4  ;;  %v1688_v26 = vrot.slane %v1674_v28, 5 }
 0x13a   : > { %v1642_v46 = vadd.f32 %v1636_v52, %v1615_v57  ;;  %v1705_v3 = vsel %vm333_vm3, %v1703_v5, %v1704_v24  ;;  %v1718_v21 = vrot.slane %v3137_v47, 7  ;;  %v1741_v52 = vrot.slane %v1735_v13, 1  ;;  %v3501_v24 = vld [vmem:[#allocation45_spill] sm:$0xff] }
 0x13b   : > { %v1745_v62 = vadd.f32 %v1739_v53, %v1730_v30  ;;  %v1663_v54 = vsel %vm289_vm1, %v1661_v45, %v1662_v11  ;;  %v1690_v38 = vsel %vm317_vm2, %v1688_v26, %v1689_v22  ;;  %v1750_v11 = vmul.f32 0.0010283804, %v3123_v41 }
 0x13c   : > { %1526 = vrot.lane.b32.xlu1 %v2921_v9, %s2274_s25  ;;  %v1734_v9 = vmul.f32 0.0075987587, %v3056_v23  ;;  %v1669_v53 = vadd.f32 %v1663_v54, %v1642_v46  ;;  %v1720_v42 = vsel %vm349_vm4, %v1718_v21, %v1719_v61  ;;  %v3224_v28 = vmul.f32 0.0010283804, %v2860_v25 }
 0x13d   : > { %866 = vrot.lane.b32.xlu0 %v2643_v32, %s2276_s12  ;;  %v3160_v32 = vpop.permute.xlu1 %1090 }
 0x13e   : > { %v1740_v16 = vrot.slane %v1734_v9, 1  ;;  %v738_v9 = vmul.f32 0.0010283804, %v2663_v4 }
 0x140   : > { %858 = vrot.lane.b32.xlu1 %v2730_v20, %s2275_s27  ;;  %v1749_v20 = vmul.f32 0.0010283804, %v3056_v23 }
 0x141   : > { %1188 = vrot.lane.b32.xlu0 %v2935_v7, %s2274_s25  ;;  %v3174_v7 = vadd.f32 %v1754_v0, %v1745_v62  ;;  %v1433_v39 = vpop.permute.xlu1 %1432 }
 0x142   : > { %v1755_v23 = vrot.slane %v1749_v20, 2 }
 0x144   : > { %868 = vrot.lane.b32.xlu1 %v2674_v43, %s2276_s12  ;;  %v3184_v43 = vmul.f32 0.0075987587, %v3174_v7 }
 0x145   : > { %1198 = vrot.lane.b32.xlu0 %v2851_v1, %s2275_s27  ;;  %v1746_v1 = vadd.f32 %v1740_v16, %v1731_v37  ;;  %v3191_v48 = vpop.permute.xlu1 %1106  ;;  %v3229_v37 = vmul.f32 0.0010283804, %v2823_v18 }
 0x147   : > { %v3177_v30 = vpop.permute.xlu0 %1092  ;;  %v1440_v54 = vadd.f32 %v1433_v39, %v3229_v37 }
 0x148   : > { %1196 = vrot.lane.b32.xlu1 %v2826_v49, %s2275_s27  ;;  %v3195_v49 = vadd.f32 %v1755_v23, %v1746_v1  ;;  %v3252_v23 = vmul.f32 0.0010283804, %v2841_v6  ;;  %v756_v6 = vadd.f32 %v3501_v24, %v738_v9 }
 0x149   : > { %1538 = vrot.lane.b32.xlu0 %v2856_v10, %s2275_s27  ;;  %v1696_v10 = vadd.f32 %v1690_v38, %v1669_v53  ;;  %v739_v38 = vmul.f32 0.0010283804, %v2703_v44 }
 0x14a   : > { %v3270_v61 = vmul.f32 0.036000773, %v3195_v49  ;;  %v774_v44 = vadd.f32 %v3096_v19, %v756_v6 }
 0x14b   : > { %v3187_v33 = vpop.permute.xlu0 %1108  ;;  %v1711_v0 = vadd.f32 %v1705_v3, %v1696_v10  ;;  %v1099_v10 = vadd.f32 %v3177_v30, %v3252_v23 }
 0x14c   : > { %1530 = vrot.lane.b32.xlu1 %v2968_v55, %s2274_s25  ;;  %v3205_v55 = vmul.f32 0.0075987587, %v3195_v49 }
 0x14d   : > { %1772 = vrot.lane.b32.xlu0 %v3184_v43, %s2268_s18 }
 0x14f   : > { %v3200_v59 = vpop.permute.xlu0 %1448 }
 0x150   : > { %1540 = vrot.lane.b32.xlu1 %v2873_v8, %s2275_s27  ;;  %v1726_v8 = vadd.f32 %v1720_v42, %v1711_v0  ;;  %v3503_v0 = vld [vmem:[#allocation12_spill] sm:$0xff] }
 0x151   : > { %870 = vrot.lane.b32.xlu0 %v2712_v50, %s2276_s12  ;;  %v737_v50 = vmul.f32 0.0010283804, %v2628_v14  ;;  %v1421_v42 = vmul.f32 0.0010283804, %v3503_v0 }
 0x152   : > { %v1435_v62 = vpop.permute.xlu1 %1434  ;;  %v1732_v4 = vadd.f32 %v1729_v51, %v1726_v8  ;;  %v792_v8 = vadd.f32 %v3142_v35, %v774_v44 }
 0x153   : > { %v3211_v47 = vpop.permute.xlu0 %786  ;;  %v1441_v16 = vadd.f32 %v1435_v62, %v3224_v28  ;;  %v755_v25 = vadd.f32 %v3061_v27, %v737_v50  ;;  %v1439_v19 = vadd.f32 %v3164_v40, %v1421_v42 }
 0x154   : > { %1774 = vrot.lane.b32.xlu1 %v3205_v55, %s2268_s18  ;;  %v1747_v14 = vadd.f32 %v1741_v52, %v1732_v4  ;;  %v3504_v4 = vld [vmem:[#allocation46_spill] sm:$0xff] }
 0x155   : > { %883 = vrot.lane.b32.xlu0 %v738_v9, %s2277_s21  ;;  %v757_v52 = vadd.f32 %v3504_v4, %v739_v38 }
 0x156   : > { %v1451_v57 = vpop.permute.xlu1 %1450 }
 0x157   : > { %v803_v45 = vpop.permute.xlu0 %802  ;;  %v1458_v22 = vadd.f32 %v1451_v57, %v1440_v54 }
 0x158   : > { %881 = vrot.lane.b32.xlu1 %v737_v50, %s2277_s21 }
 0x159   : > { %1208 = vrot.lane.b32.xlu0 %v2765_v31, %s2276_s12  ;;  %v1756_v31 = vrot.slane %v1750_v11, 2 }
 0x15a   : > { %v801_v60 = vpop.permute.xlu1 %800 }
 0x15b   : > { %v3226_v20 = vpop.permute.xlu0 %1124  ;;  %v3244_v18 = vadd.f32 %v1756_v31, %v1747_v14 }
 0x15c   : > { %1200 = vrot.lane.b32.xlu1 %v2893_v58, %s2275_s27  ;;  %v3247_v58 = vmul.f32 0.036000773, %v3174_v7 }
 0x15d   : > { %1542 = vrot.lane.b32.xlu0 %v2898_v34, %s2275_s27  ;;  %v773_v34 = vadd.f32 %v3094_v29, %v755_v25 }
 0x15e   : > { %v1111_v41 = vpop.permute.xlu1 %1110 }
 0x15f   : > { %v1453_v46 = vpop.permute.xlu0 %1452  ;;  %v791_v39 = vadd.f32 %v3116_v56, %v773_v34  ;;  %v1117_v9 = vadd.f32 %v1111_v41, %v1099_v10  ;;  %v3506_v41 = vld [vmem:[#allocation15_spill] sm:$0xff] }
 0x160   : > { %v3238_v26 = vadd.f32 %v1453_v46, %v1441_v16  ;;  %1210 = vrot.lane.b32.xlu1 %v2783_v12, %s2276_s12  ;;  %v3257_v12 = vmul.f32 0.0075987587, %v3244_v18  ;;  %v3505_v16 = vld [vmem:[#allocation13_spill] sm:$0xff] }
 0x161   : > { %1552 = vrot.lane.b32.xlu0 %v2831_v36, %s2276_s12  ;;  %v1080_v36 = vmul.f32 0.0010283804, %v2775_v2  ;;  %v809_v29 = vadd.f32 %v801_v60, %v791_v39  ;;  %v3300_v39 = vmul.f32 0.036000773, %v3244_v18 }
 0x162   : > { %v1127_v1 = vpop.permute.xlu1 %1126 }
 0x163   : > { %v1469_v27 = vpop.permute.xlu0 %1468  ;;  %v1098_v2 = vadd.f32 %v3160_v32, %v1080_v36  ;;  %v810_v32 = vadd.f32 %v803_v45, %v792_v8 }
 0x164   : > { %v1476_v53 = vadd.f32 %v1469_v27, %v1458_v22  ;;  %1550 = vrot.lane.b32.xlu1 %v2809_v15, %s2276_s12  ;;  %v3502_v15 = vld [vmem:[#allocation11_spill] sm:$0xff] }
 0x165   : > { %1790 = vrot.lane.b32.xlu0 %v3247_v58, %s2269_s16  ;;  %v1079_v21 = vmul.f32 0.0010283804, %v3502_v15  ;;  %v1116_v51 = vadd.f32 %v3187_v33, %v1098_v2  ;;  %v1457_v33 = vadd.f32 %v3200_v59, %v1439_v19  ;;  %v1802_v59 = vmul.f32 0.1093607, %v3174_v7 }
 0x166   : > { %v1467_v5 = vpop.permute.xlu1 %1466 }
 0x167   : > { %v819_v56 = vpop.permute.xlu0 %818  ;;  %v1097_v50 = vadd.f32 %v3144_v63, %v1079_v21  ;;  %v1134_v57 = vadd.f32 %v1127_v1, %v1116_v51  ;;  %v775_v63 = vadd.f32 %v3114_v17, %v757_v52  ;;  %v1475_v45 = vadd.f32 %v1467_v5, %v1457_v33 }
 0x168   : > { %v827_v3 = vadd.f32 %v819_v56, %v809_v29  ;;  %1776 = vrot.lane.b32.xlu1 %v3257_v12, %s2268_s18 }
 0x169   : > { %885 = vrot.lane.b32.xlu0 %v739_v38, %s2277_s21  ;;  %v1115_v35 = vadd.f32 %v3191_v48, %v1097_v50  ;;  %v793_v54 = vadd.f32 %v3211_v47, %v775_v63  ;;  %v1839_v50 = vmul.f32 0.26601174, %v3195_v49 }
 0x16a   : > { %v805_v62 = vpop.permute.xlu1 %804 }
 0x16b   : > { %v1129_v30 = vpop.permute.xlu0 %1128  ;;  %v1133_v40 = vadd.f32 %v3226_v20, %v1115_v35  ;;  %v811_v22 = vadd.f32 %v805_v62, %v793_v54  ;;  %v1822_v62 = vmul.f32 0.21300554, %v3244_v18 }
 0x16c   : > { %v1135_v13 = vadd.f32 %v1129_v30, %v1117_v9  ;;  %1792 = vrot.lane.b32.xlu1 %v3270_v61, %s2269_s16  ;;  %v1840_v30 = vmul.f32 0.26601174, %v3244_v18 }
 0x16d   : > { %1223 = vrot.lane.b32.xlu0 %v1079_v21, %s2277_s21 }
 0x16e   : > { %v821_v11 = vpop.permute.xlu1 %820 }
 0x16f   : > { %v1145_v60 = vpop.permute.xlu0 %1144  ;;  %v828_v14 = vadd.f32 %v821_v11, %v810_v32 }
 0x170   : > { %v1152_v31 = vadd.f32 %v1145_v60, %v1134_v57  ;;  %1212 = vrot.lane.b32.xlu1 %v3505_v16, %s2276_s12 }
 0x171   : > { %1554 = vrot.lane.b32.xlu0 %v3506_v41, %s2276_s12 }
 0x172   : > { %v1143_v46 = vpop.permute.xlu1 %1142 }
 0x173   : > { %v1485_v25 = vpop.permute.xlu0 %1484  ;;  %v1151_v48 = vadd.f32 %v1143_v46, %v1133_v40 }
 0x174   : > { %v1493_v34 = vadd.f32 %v1485_v25, %v1475_v45  ;;  %1225 = vrot.lane.b32.xlu1 %v1080_v36, %s2277_s21 }
 0x175   : > { %1567 = vrot.lane.b32.xlu0 %v3229_v37, %s2277_s21  ;;  %v1803_v37 = vmul.f32 0.1093607, %v3195_v49 }
 0x176   : > { %v1471_v1 = vpop.permute.xlu1 %1470 }
 0x177   : > { %v823_v27 = vpop.permute.xlu0 %822  ;;  %v1477_v17 = vadd.f32 %v1471_v1, %v3238_v26  ;;  %v1804_v26 = vmul.f32 0.1093607, %v3244_v18 }
 0x178   : > { %v829_v20 = vadd.f32 %v823_v27, %v811_v22  ;;  %1565 = vrot.lane.b32.xlu1 %v1421_v42, %s2277_s21 }
 0x179   : > { %1808 = vrot.lane.b32.xlu0 %v1802_v59, %s2270_s23 }
 0x17a   : > { %v1487_v47 = vpop.permute.xlu1 %1486 }
 0x17b   : > { %v833_v36 = vpop.permute.xlu0 %832  ;;  %v1494_v29 = vadd.f32 %v1487_v47, %v1476_v53  ;;  %v1821_v53 = vmul.f32 0.21300554, %v3195_v49 }
 0x17c   : > { %v840_v38 = vadd.f32 %v833_v36, %v828_v14  ;;  %1794 = vrot.lane.b32.xlu1 %v3300_v39, %s2269_s16 }
 0x17d   : > { %1227 = vrot.lane.b32.xlu0 %v3252_v23, %s2277_s21  ;;  %v1820_v23 = vmul.f32 0.21300554, %v3174_v7 }
 0x17e   : > { %v831_v5 = vpop.permute.xlu1 %830 }
 0x17f   : > { %v1161_v56 = vpop.permute.xlu0 %1160  ;;  %v839_v24 = vadd.f32 %v831_v5, %v827_v3  ;;  %v1838_v3 = vmul.f32 0.26601174, %v3174_v7  ;;  %v3507_v5 = vld [vmem:[#allocation10_spill] sm:$0xff] }
 0x180   : > { %v1169_v6 = vadd.f32 %v1161_v56, %v1151_v48  ;;  %1810 = vrot.lane.b32.xlu1 %v1803_v37, %s2270_s23  ;;  %v3508_v56 = vld [vmem:[#allocation19_spill] sm:$0xff] }
 0x181   : > { %1812 = vrot.lane.b32.xlu0 %v1804_v26, %s2270_s23 }
 0x182   : > { %v1147_v10 = vpop.permute.xlu1 %1146 }
 0x183   : > { %v1489_v15 = vpop.permute.xlu0 %1488  ;;  %v1153_v21 = vadd.f32 %v1147_v10, %v1135_v13  ;;  %v3509_v10 = vld [vmem:[#allocation21_spill] sm:$0xff] }
 0x184   : > { %v1495_v44 = vadd.f32 %v1489_v15, %v1477_v17  ;;  %1569 = vrot.lane.b32.xlu1 %v3224_v28, %s2277_s21 }
 0x185   : > { %1828 = vrot.lane.b32.xlu0 %v1821_v53, %s2271_s29 }
 0x186   : > { %v1163_v2 = vpop.permute.xlu1 %1162 }
 0x187   : > { %v1505_v0 = vpop.permute.xlu0 %1504  ;;  %v1170_v42 = vadd.f32 %v1163_v2, %v1152_v31 }
 0x188   : > { %v1512_v9 = vadd.f32 %v1505_v0, %v1494_v29  ;;  %1826 = vrot.lane.b32.xlu1 %v1820_v23, %s2271_s29  ;;  %v3511_v0 = vld [vmem:[#allocation27_spill] sm:$0xff] }
 0x189   : > { %1844 = vrot.lane.b32.xlu0 %v1838_v3, %s2272_s30 }
 0x18a   : > { %v1503_v8 = vpop.permute.xlu1 %1502 }
 0x18b   : > { %v843_v28 = vpop.permute.xlu0 %842  ;;  %v1511_v51 = vadd.f32 %v1503_v8, %v1493_v34 }
 0x18c   : > { %v851_v13 = vadd.f32 %v843_v28, %v839_v24  ;;  %1830 = vrot.lane.b32.xlu1 %v1822_v62, %s2271_s29  ;;  %v420_v24 = vadd.f32 %v3508_v56, %v3507_v5  ;;  %v3523_v5 = vld [vmem:[#allocation31_spill] sm:$0xff] }
 0x18d   : > { %1848 = vrot.lane.b32.xlu0 %v1840_v30, %s2272_s30  ;;  %v3512_v30 = vld [vmem:[#allocation26_spill] sm:$0xff] }
 0x18e   : > { %v835_v19 = vpop.permute.xlu1 %834  ;;  %v438_v15 = vadd.f32 %v3509_v10, %v420_v24 }
 0x18f   : > { %v1165_v32 = vpop.permute.xlu0 %1164  ;;  %v841_v57 = vadd.f32 %v835_v19, %v829_v20 }
 0x190   : > { %v1171_v4 = vadd.f32 %v1165_v32, %v1153_v21  ;;  %1846 = vrot.lane.b32.xlu1 %v1839_v50, %s2272_s30 }
 0x191   : > { %1858 = vrot.lane.b32.xlu0 %v1821_v53, %s2273_s4 }
 0x192   : > { %v845_v52 = vpop.permute.xlu1 %844 }
 0x193   : > { %v1175_v11 = vpop.permute.xlu0 %1174  ;;  %v852_v60 = vadd.f32 %v845_v52, %v840_v38 }
 0x194   : > { %v1182_v35 = vadd.f32 %v1175_v11, %v1170_v42  ;;  %1856 = vrot.lane.b32.xlu1 %v1820_v23, %s2273_s4 }
 0x195   : > { %1868 = vrot.lane.b32.xlu0 %v1802_v59, %s2274_s25 }
 0x196   : > { %v1173_v33 = vpop.permute.xlu1 %1172 }
 0x197   : > { %v1515_v14 = vpop.permute.xlu0 %1514  ;;  %v1181_v31 = vadd.f32 %v1173_v33, %v1169_v6 }
 0x198   : > { %v1523_v16 = vadd.f32 %v1515_v14, %v1511_v51  ;;  %1860 = vrot.lane.b32.xlu1 %v1822_v62, %s2273_s4 }
 0x199   : > { %1872 = vrot.lane.b32.xlu0 %v1804_v26, %s2274_s25 }
 0x19a   : > { %v1507_v41 = vpop.permute.xlu1 %1506 }
 0x19b   : > { %v847_v63 = vpop.permute.xlu0 %846  ;;  %v1513_v40 = vadd.f32 %v1507_v41, %v1495_v44 }
 0x19c   : > { %v853_v45 = vadd.f32 %v847_v63, %v841_v57  ;;  %1870 = vrot.lane.b32.xlu1 %v1803_v37, %s2274_s25  ;;  %v3514_v57 = vld [vmem:[#allocation32_spill] sm:$0xff] }
 0x19d   : > { %1882 = vrot.lane.b32.xlu0 %v3270_v61, %s2275_s27  ;;  %v1764_v61 = vmul.f32 0.0010283804, %v3195_v49 }
 0x19e   : > { %v1517_v46 = vpop.permute.xlu1 %1516 }
 0x19f   : > { %v857_v25 = vpop.permute.xlu0 %856  ;;  %v1524_v54 = vadd.f32 %v1517_v46, %v1512_v9 }
 0x1a0   : > { %v864_v48 = vadd.f32 %v857_v25, %v852_v60  ;;  %1880 = vrot.lane.b32.xlu1 %v3247_v58, %s2275_s27  ;;  %v3515_v60 = vld [vmem:[#allocation38_spill] sm:$0xff] }
 0x1a1   : > { %1892 = vrot.lane.b32.xlu0 %v3184_v43, %s2276_s12  ;;  %v1763_v43 = vmul.f32 0.0010283804, %v3174_v7 }
 0x1a2   : > { %v855_v34 = vpop.permute.xlu1 %854 }
 0x1a3   : > { %v1185_v59 = vpop.permute.xlu0 %1184  ;;  %v863_v22 = vadd.f32 %v855_v34, %v851_v13  ;;  %v3513_v13 = vld [vmem:[#allocation33_spill] sm:$0xff] }
 0x1a4   : > { %v1193_v1 = vadd.f32 %v1185_v59, %v1181_v31  ;;  %1884 = vrot.lane.b32.xlu1 %v3300_v39, %s2275_s27  ;;  %v3516_v31 = vld [vmem:[#allocation39_spill] sm:$0xff] }
 0x1a5   : > { %1896 = vrot.lane.b32.xlu0 %v3257_v12, %s2276_s12  ;;  %v3348_v12 = vmul.f32 0.0010283804, %v3244_v18  ;;  %v3510_v18 = vld [vmem:[#allocation20_spill] sm:$0xff] }
 0x1a6   : > { %v1177_v27 = vpop.permute.xlu1 %1176  ;;  %v456_v23 = vadd.f32 %v3510_v18, %v438_v15 }
 0x1a7   : > { %v1519_v17 = vpop.permute.xlu0 %1518  ;;  %v1183_v20 = vadd.f32 %v1177_v27, %v1171_v4 }
 0x1a8   : > { %v1525_v47 = vadd.f32 %v1519_v17, %v1513_v40  ;;  %1894 = vrot.lane.b32.xlu1 %v3205_v55, %s2276_s12  ;;  %v474_v42 = vadd.f32 %v3511_v0, %v456_v23  ;;  %v3517_v40 = vld [vmem:[#allocation43_spill] sm:$0xff]  ;;  %v3526_v23 = vld [vmem:[#allocation9_spill] sm:$0xff] }
 0x1a9   : > { %1909 = vrot.lane.b32.xlu0 %v1764_v61, %s2277_s21  ;;  %v3528_v0 = vld [vmem:[#allocation37_spill] sm:$0xff] }
 0x1aa   : > { %v1187_v58 = vpop.permute.xlu1 %1186  ;;  %v492_v8 = vadd.f32 %v3512_v30, %v474_v42 }
 0x1ab   : > { %v1529_v36 = vpop.permute.xlu0 %1528  ;;  %v1194_v29 = vadd.f32 %v1187_v58, %v1182_v35 }
 0x1ac   : > { %v1536_v39 = vadd.f32 %v1529_v36, %v1524_v54  ;;  %1907 = vrot.lane.b32.xlu1 %v1763_v43, %s2277_s21  ;;  %v504_v50 = vadd.f32 %v3513_v13, %v492_v8  ;;  %v3518_v54 = vld [vmem:[#allocation8_spill] sm:$0xff]  ;;  %v3521_v36 = vld [vmem:[#allocation25_spill] sm:$0xff] }
 0x1ae   : > { %v1527_v49 = vpop.permute.xlu1 %1526  ;;  %v516_v4 = vadd.f32 %v3514_v57, %v504_v50  ;;  %v3531_v50 = vld [vmem:[#allocation23_spill] sm:$0xff]  ;;  %v3533_v57 = vld [vmem:[#allocation22_spill] sm:$0xff] }
 0x1af   : > { %v867_v38 = vpop.permute.xlu0 %866  ;;  %v1535_v37 = vadd.f32 %v1527_v49, %v1523_v16 }
 0x1b0   : > { %v875_v26 = vadd.f32 %v867_v38, %v863_v22  ;;  %1911 = vrot.lane.b32.xlu1 %v3348_v12, %s2277_s21  ;;  %v528_v35 = vadd.f32 %v3515_v60, %v516_v4 }
 0x1b2   : > { %v859_v55 = vpop.permute.xlu1 %858  ;;  %v540_v16 = vadd.f32 %v3516_v31, %v528_v35 }
 0x1b3   : > { %v1189_v7 = vpop.permute.xlu0 %1188  ;;  %v865_v6 = vadd.f32 %v859_v55, %v853_v45 }
 0x1b4   : > { %v1195_v53 = vadd.f32 %v1189_v7, %v1183_v20  ;;  %v555_v45 = vadd.f32 %v3517_v40, %v540_v16 }
 0x1b6   : > { %v869_v21 = vpop.permute.xlu1 %868  ;;  %v1920_v17 = vmul.f32 %v555_v45, %v555_v45 }
 0x1b7   : > { %v1199_v44 = vpop.permute.xlu0 %1198  ;;  %v876_v3 = vadd.f32 %v869_v21, %v864_v48  ;;  %v3519_v48 = vld [vmem:[#allocation14_spill] sm:$0xff] }
 0x1b8   : > { %v3356_v2 = vadd.f32 %v1199_v44, %v1194_v29  ;;  %v421_v34 = vadd.f32 %v3519_v48, %v3518_v54  ;;  %v3525_v44 = vld [vmem:[#allocation36_spill] sm:$0xff] }
 0x1ba   : > { %v1197_v9 = vpop.permute.xlu1 %1196 }
 0x1bb   : > { %v1539_v62 = vpop.permute.xlu0 %1538  ;;  %v1205_v28 = vadd.f32 %v1197_v9, %v1193_v1  ;;  %v3520_v1 = vld [vmem:[#allocation18_spill] sm:$0xff]  ;;  %v3529_v9 = vld [vmem:[#allocation16_spill] sm:$0xff] }
 0x1bc   : > { %v3360_v51 = vadd.f32 %v1539_v62, %v1535_v37  ;;  %v439_v27 = vadd.f32 %v3520_v1, %v421_v34  ;;  %v3522_v37 = vld [vmem:[#allocation24_spill] sm:$0xff] }
 0x1be   : > { %v1531_v19 = vpop.permute.xlu1 %1530  ;;  %v457_v29 = vadd.f32 %v3521_v36, %v439_v27  ;;  %v3537_v27 = vld [vmem:[#allocation35_spill] sm:$0xff] }
 0x1bf   : > { %v1773_v32 = vpop.permute.xlu0 %1772  ;;  %v3364_v52 = vadd.f32 %v1531_v19, %v1525_v47  ;;  %v3532_v19 = vld [vmem:[#allocation44_spill] sm:$0xff] }
 0x1c0   : > { %v3366_v11 = vadd.f32 %v1773_v32, %v1763_v43  ;;  %v475_v55 = vadd.f32 %v3522_v37, %v457_v29  ;;  %v3538_v29 = vld [vmem:[#allocation40_spill] sm:$0xff] }
 0x1c2   : > { %v1541_v33 = vpop.permute.xlu1 %1540  ;;  %v493_v56 = vadd.f32 %v3523_v5, %v475_v55 }
 0x1c3   : > { %v871_v14 = vpop.permute.xlu0 %870  ;;  %v1548_v41 = vadd.f32 %v1541_v33, %v1536_v39 }
 0x1c4   : > { %v877_v63 = vadd.f32 %v871_v14, %v865_v6  ;;  %v3524_v6 = vld [vmem:[#allocation30_spill] sm:$0xff]  ;;  %v3534_v14 = vld [vmem:[#allocation29_spill] sm:$0xff] }
 0x1c5   : > { %v505_v10 = vadd.f32 %v3524_v6, %v493_v56 }
 0x1c6   : > { %v1775_v46 = vpop.permute.xlu1 %1774 }
 0x1c7   : > { %v884_v25 = vpop.permute.xlu0 %883  ;;  %v3373_v59 = vadd.f32 %v1775_v46, %v1764_v61  ;;  %v517_v18 = vadd.f32 %v3525_v44, %v505_v10  ;;  %v3535_v46 = vld [vmem:[#allocation28_spill] sm:$0xff] }
 0x1c8   : > { %v891_v22 = vadd.f32 %v884_v25, %v876_v3  ;;  %v3527_v3 = vld [vmem:[#allocation17_spill] sm:$0xff] }
 0x1c9   : > { %v529_v42 = vadd.f32 %v3528_v0, %v517_v18 }
 0x1ca   : > { %v1923_v20 = vmul.f32 %v891_v22, %v891_v22  ;;  %v3376_v47 = vmul.f32 %v891_v22, %v555_v45  ;;  %v882_v43 = vpop.permute.xlu1 %881  ;;  %v3536_v22 = vld [vmem:[#allocation34_spill] sm:$0xff] }
 0x1cb   : > { %v1209_v58 = vpop.permute.xlu0 %1208  ;;  %v3379_v39 = vadd.f32 %v882_v43, %v875_v26  ;;  %v419_v26 = vadd.f32 %v3527_v3, %v3526_v23 }
 0x1cc   : > { %v1953_v49 = vadd.f32 %v1923_v20, %v1920_v17  ;;  %v1217_v38 = vadd.f32 %v1209_v58, %v1205_v28  ;;  %v3530_v28 = vld [vmem:[#allocation41_spill] sm:$0xff] }
 0x1cd   : > { %v437_v62 = vadd.f32 %v3529_v9, %v419_v26  ;;  %v541_v13 = vadd.f32 %v3530_v28, %v529_v42  ;;  %v1922_v18 = vmul.f32 %v3379_v39, %v3379_v39 }
 0x1ce   : > { %v1201_v7 = vpop.permute.xlu1 %1200 }
 0x1cf   : > { %v3382_v61 = vpop.permute.xlu0 %1542  ;;  %v1207_v24 = vadd.f32 %v1201_v7, %v1195_v53  ;;  %v455_v53 = vadd.f32 %v3531_v50, %v437_v62  ;;  %v556_v32 = vadd.f32 %v3532_v19, %v541_v13  ;;  %v3539_v7 = vld [vmem:[#allocation42_spill] sm:$0xff]  ;;  %v1956_v62 = vadd.f32 6.5025, %v1953_v49 }
 0x1d1   : > { %v473_v4 = vadd.f32 %v3533_v57, %v455_v53  ;;  %v1921_v16 = vmul.f32 %v556_v32, %v556_v32 }
 0x1d2   : > { %v1211_v15 = vpop.permute.xlu1 %1210 }
 0x1d3   : > { %v1553_v21 = vpop.permute.xlu0 %1552  ;;  %v491_v31 = vadd.f32 %v3534_v14, %v473_v4 }
 0x1d4   : > { %v1560_v55 = vadd.f32 %v1553_v21, %v1548_v41 }
 0x1d5   : > { %v503_v25 = vadd.f32 %v3535_v46, %v491_v31 }
 0x1d6   : > { %v1551_v30 = vpop.permute.xlu1 %1550 }
 0x1d7   : > { %v3391_v8 = vpop.permute.xlu0 %1790  ;;  %v515_v1 = vadd.f32 %v3536_v22, %v503_v25  ;;  %v1559_v23 = vadd.f32 %v1551_v30, %v3360_v51 }
 0x1d9   : > { %v527_v43 = vadd.f32 %v3537_v27, %v515_v1 }
 0x1da   : > { %v3397_v60 = vpop.permute.xlu1 %1776 }
 0x1db   : > { %v886_v35 = vpop.permute.xlu0 %885  ;;  %v539_v37 = vadd.f32 %v3538_v29, %v527_v43 }
 0x1dc   : > { %v892_v33 = vadd.f32 %v886_v35, %v877_v63  ;;  %v1218_v63 = vadd.f32 %v1211_v15, %v3356_v2 }
 0x1dd   : > { %v3408_v5 = vadd.f32 %v3539_v7, %v539_v37 }
 0x1de   : > { %v1924_v40 = vmul.f32 %v892_v33, %v892_v33  ;;  %v3400_v45 = vmul.f32 %v892_v33, %v556_v32  ;;  %v1793_v54 = vpop.permute.xlu1 %1792  ;;  %v1549_v33 = vadd.f32 %v3382_v61, %v3364_v52 }
 0x1df   : > { %v1224_v48 = vpop.permute.xlu0 %1223  ;;  %v1919_v42 = vmul.f32 %v3408_v5, %v3408_v5  ;;  %v1800_v61 = vadd.f32 %v1793_v54, %v3373_v59 }
 0x1e0   : > { %v1954_v34 = vadd.f32 %v1924_v40, %v1921_v16  ;;  %v1232_v3 = vadd.f32 %v1224_v48, %v1217_v38 }
 0x1e1   : > { %v1952_v9 = vadd.f32 %v1922_v18, %v1919_v42 }
 0x1e2   : > { %v1213_v58 = vpop.permute.xlu1 %1212  ;;  %v1928_v13 = vsub.f32 %v1232_v3, %v1919_v42  ;;  %v1957_v27 = vadd.f32 6.5025, %v1954_v34  ;;  %v1783_v34 = vadd.f32 %v3397_v60, %v3348_v12 }
 0x1e3   : > { %v1555_v36 = vpop.permute.xlu0 %1554  ;;  %v1219_v28 = vadd.f32 %v1213_v58, %v1207_v24 }
 0x1e4   : > { %v1561_v31 = vadd.f32 %v1555_v36, %v1549_v33 }
 0x1e6   : > { %v1226_v56 = vpop.permute.xlu1 %1225 }
 0x1e7   : > { %v1568_v6 = vpop.permute.xlu0 %1567  ;;  %v1233_v10 = vadd.f32 %v1226_v56, %v1218_v63 }
 0x1e8   : > { %v1575_v44 = vadd.f32 %v1568_v6, %v1560_v55 }
 0x1e9   : > { %v1929_v26 = vsub.f32 %v1233_v10, %v1920_v17  ;;  %v1955_v17 = vadd.f32 6.5025, %v1952_v9 }
 0x1ea   : > { %v1932_v0 = vsub.f32 %v1575_v44, %v1923_v20  ;;  %v1566_v2 = vpop.permute.xlu1 %1565 }
 0x1eb   : > { %v1809_v41 = vpop.permute.xlu0 %1808  ;;  %v1574_v15 = vadd.f32 %v1566_v2, %v1559_v23 }
 0x1ec   : > { %v1959_v21 = vadd.f32 %v1932_v0, %v1929_v26 }
 0x1ed   : > { %v1931_v50 = vsub.f32 %v1574_v15, %v1922_v18 }
 0x1ee   : > { %v1962_v53 = vadd.f32 58.5225, %v1959_v21  ;;  %v1795_v19 = vpop.permute.xlu1 %1794 }
 0x1ef   : > { %v1228_v32 = vpop.permute.xlu0 %1227  ;;  %v1958_v57 = vadd.f32 %v1931_v50, %v1928_v13  ;;  %v1801_v26 = vadd.f32 %v1795_v19, %v1783_v34  ;;  %v1925_v19 = vmul.f32 %v3379_v39, %v3408_v5 }
 0x1f0   : > { %v1965_v51 = vmul.f32 %v1962_v53, %v1956_v62  ;;  %v1234_v38 = vadd.f32 %v1228_v32, %v1219_v28 }
 0x1f1   : > { %v1961_v20 = vadd.f32 58.5225, %v1958_v57 }
 0x1f2   : > { %v1930_v30 = vsub.f32 %v1234_v38, %v1921_v16  ;;  %v1811_v4 = vpop.permute.xlu1 %1810  ;;  %2150 = vrcp.f32 %v1965_v51 }
 0x1f3   : > { %v1813_v35 = vpop.permute.xlu0 %1812  ;;  %v1964_v14 = vmul.f32 %v1961_v20, %v1955_v17  ;;  %v1818_v10 = vadd.f32 %v1811_v4, %v1800_v61  ;;  %v1938_v17 = vmul.f32 2.0, %v3376_v47 }
 0x1f4   : > { %v1819_v2 = vadd.f32 %v1813_v35, %v1801_v26  ;;  %v1937_v35 = vmul.f32 2.0, %v1925_v19 }
 0x1f5   : > { %2152 = vrcp.f32 %v1964_v14 }
 0x1f6   : > { %v1570_v49 = vpop.permute.xlu1 %1569  ;;  %v1940_v5 = vadd.f32 6.5025, %v1937_v35 }
 0x1f7   : > { %v1829_v24 = vpop.permute.xlu0 %1828  ;;  %v1576_v46 = vadd.f32 %v1570_v49, %v1561_v31 }
 0x1f8   : > { %v1836_v18 = vadd.f32 %v1829_v24, %v1818_v10  ;;  %v1941_v24 = vadd.f32 6.5025, %v1938_v17 }
 0x1f9   : > { %v1933_v25 = vsub.f32 %v1576_v46, %v1924_v40  ;;  %v1799_v40 = vadd.f32 %v3391_v8, %v3366_v11 }
 0x1fa   : > { %v1827_v48 = vpop.permute.xlu1 %1826 }
 0x1fb   : > { %v1845_v22 = vpop.permute.xlu0 %1844  ;;  %v1960_v1 = vadd.f32 %v1933_v25, %v1930_v30  ;;  %v1817_v44 = vadd.f32 %v1809_v41, %v1799_v40 }
 0x1fd   : > { %v1963_v43 = vadd.f32 58.5225, %v1960_v1  ;;  %v1835_v0 = vadd.f32 %v1827_v48, %v1817_v44  ;;  %v1939_v48 = vmul.f32 2.0, %v3400_v45 }
 0x1fe   : > { %v1831_v58 = vpop.permute.xlu1 %1830 }
 0x1ff   : > { %v1849_v29 = vpop.permute.xlu0 %1848  ;;  %v1966_v37 = vmul.f32 %v1963_v43, %v1957_v27  ;;  %v1853_v15 = vadd.f32 %v1845_v22, %v1835_v0  ;;  %v1837_v9 = vadd.f32 %v1831_v58, %v1819_v2  ;;  %v2151_v43 = vpop.eup %2150 }
 0x201   : > { %v1855_v11 = vadd.f32 %v1849_v29, %v1837_v9  ;;  %2154 = vrcp.f32 %v1966_v37 }
 0x202   : > { %v1847_v16 = vpop.permute.xlu1 %1846  ;;  %v2153_v37 = vpop.eup %2152 }
 0x203   : > { %v1859_v63 = vpop.permute.xlu0 %1858  ;;  %v1854_v42 = vadd.f32 %v1847_v16, %v1836_v18  ;;  %v1942_v16 = vadd.f32 6.5025, %v1939_v48 }
 0x205   : > { %v1866_v21 = vadd.f32 %v1859_v63, %v1854_v42 }
 0x206   : > { %v1857_v55 = vpop.permute.xlu1 %1856 }
 0x207   : > { %v1869_v7 = vpop.permute.xlu0 %1868  ;;  %v1865_v62 = vadd.f32 %v1857_v55, %v1853_v15 }
 0x209   : > { %v1877_v8 = vadd.f32 %v1869_v7, %v1865_v62 }
 0x20a   : > { %v1861_v56 = vpop.permute.xlu1 %1860 }
 0x20b   : > { %v1873_v52 = vpop.permute.xlu0 %1872  ;;  %v1867_v41 = vadd.f32 %v1861_v56, %v1855_v11 }
 0x20d   : > { %v1879_v32 = vadd.f32 %v1873_v52, %v1867_v41 }
 0x20e   : > { %v1871_v36 = vpop.permute.xlu1 %1870  ;;  %v2155_v61 = vpop.eup %2154 }
 0x20f   : > { %v1883_v6 = vpop.permute.xlu0 %1882  ;;  %v1878_v28 = vadd.f32 %v1871_v36, %v1866_v21 }
 0x211   : > { %v1890_v13 = vadd.f32 %v1883_v6, %v1878_v28 }
 0x212   : > { %v1881_v23 = vpop.permute.xlu1 %1880 }
 0x213   : > { %v1893_v3 = vpop.permute.xlu0 %1892  ;;  %v1889_v50 = vadd.f32 %v1881_v23, %v1877_v8 }
 0x215   : > { %v1901_v57 = vadd.f32 %v1893_v3, %v1889_v50 }
 0x216   : > { %v1885_v59 = vpop.permute.xlu1 %1884 }
 0x217   : > { %v1897_v54 = vpop.permute.xlu0 %1896  ;;  %v1891_v51 = vadd.f32 %v1885_v59, %v1879_v32 }
 0x219   : > { %v1903_v33 = vadd.f32 %v1897_v54, %v1891_v51 }
 0x21a   : > { %v1895_v12 = vpop.permute.xlu1 %1894 }
 0x21b   : > { %v1910_v60 = vpop.permute.xlu0 %1909  ;;  %v1902_v53 = vadd.f32 %v1895_v12, %v1890_v13 }
 0x21d   : > { %v1917_v38 = vadd.f32 %v1910_v60, %v1902_v53 }
 0x21e   : > { %v1908_v20 = vpop.permute.xlu1 %1907 }
 0x21f   : > { %v1916_v30 = vadd.f32 %v1908_v20, %v1901_v57  ;;  %v1935_v4 = vsub.f32 %v1917_v38, %v3376_v47 }
 0x221   : > { %v1934_v14 = vsub.f32 %v1916_v30, %v1925_v19  ;;  %v1944_v31 = vmul.f32 2.0, %v1935_v4 }
 0x222   : > { %v1912_v49 = vpop.permute.xlu1 %1911 }
 0x223   : > { %v1943_v46 = vmul.f32 2.0, %v1934_v14  ;;  %v1947_v25 = vadd.f32 58.5225, %v1944_v31  ;;  %v1918_v39 = vadd.f32 %v1912_v49, %v1903_v33 }
 0x225   : > { %v1946_v22 = vadd.f32 58.5225, %v1943_v46  ;;  %v1950_v1 = vmul.f32 %v1947_v25, %v1941_v24  ;;  %v1936_v27 = vsub.f32 %v1918_v39, %v3400_v45 }
 0x227   : > { %v1949_v58 = vmul.f32 %v1946_v22, %v1940_v5  ;;  %v1970_v29 = vmul.f32 %v2151_v43, %v1950_v1  ;;  %v1945_v47 = vmul.f32 2.0, %v1936_v27 }
 0x229   : > { %v1968_v63 = vmul.f32 %v2153_v37, %v1949_v58  ;;  %v1948_v55 = vadd.f32 58.5225, %v1945_v47  ;;  %v1975_v7 = vsel %vm1973_vm5, %v1970_v29, 0.0 }
 0x22b   : > { %v1951_v56 = vmul.f32 %v1948_v55, %v1942_v16  ;;  %v1974_v52 = vsel %vm1973_vm5, %v1968_v63, 0.0 }
 0x22c   : > { %v1976_v36 = vadd.f32 %v1975_v7, %v1974_v52 }
 0x22d   : > { %v1972_v6 = vmul.f32 %v2155_v61, %v1951_v56 }
 0x22f   : > { %v1977_v40 = vsel %vm1973_vm5, %v1972_v6, 0.0 }
 0x230   : > { %v1978_v10 = vadd.f32 %v1977_v40, %v1976_v36 }
 0x232   : > { %1979 = vadd.xlane.f32.xlu0 %v1978_v10 }
 0x2bb   : > { %v1980_v45 = vpop.xlane.xlu0 %1979 }
 0x2bc   : > { %v1981_v34 = vrot.slane %v1980_v45, 4 }
 0x2be   : > { %v1982_v44 = vadd.f32 %v1981_v34, %v1980_v45 }
 0x2c0   : > { %v1983_v18 = vrot.slane %v1982_v44, 2 }
 0x2c2   : > { %v1984_v23 = vadd.f32 %v1983_v18, %v1982_v44 }
 0x2c4   : > { %v1985_v3 = vrot.slane %v1984_v23, 1 }
 0x2c6   : > { %v1986_v26 = vadd.f32 %v1985_v3, %v1984_v23 }
 0x2c8   : > { %2092 = vpush %v1986_v26 }
 0x2f9   : > { %s2093_s19 = spop %2092 }
 0x2fa   : > { %v1988_v0 = vstv %s2093_s19 }
 0x2fb   : > { %1990 = vst.msk [vmem:[%s203_s6] sm:$0x1] %vm1989_vm6, %v1988_v0 }
 0x2fc PF: > { %p15_p11 = scmp.ge.s32.totalorder %s2315_s14, 4   ;;  %s3540_s9 = smov %s2254_s10 }
 0x2fd   : > { %s3541_s10 = smov %s2258_s11  ;;  %s3542_s11 = smov %s2325_s17 }
 0x2fe   : > { %s3543_s12 = smov %s2315_s14  ;;  %17 = sbr.rel (!%p15_p11) target bundleno = 5 (0x5), region = 81 }
 0x303   :  { %2008 = vsyncpa [#allocation3], 1 }
 0x304   :  { %2010 = vsyncpa [#allocation3 + $0x1], 1 }
 0x305   :  { %2011 = vsyncpa [#allocation5], 1 }
 0x306   :  { %2013 = vsyncpa [#allocation5 + $0x1], 1 }

</bundles_post_ra>
